<compile_context>
chip_gen: v7x
topology: tpu7x:2x2x1
jax: 0.10.0
libtpu: 0.0.40
codegen_flags: <defaults>
</compile_context>

<pallas_src>
import functools

import jax
import jax.numpy as jnp
from jax import lax
from jax.experimental import pallas as pl
from jax.experimental.pallas import tpu as pltpu


_NN = (((1,), (0,)), ((), ()))   # (M, K) @ (K, N)
_NT = (((1,), (1,)), ((), ()))   # (M, K) @ (N, K)^T
_VMEM_LIMIT = 32 * 1024 * 1024   # explicit scoped-VMEM limit; fits v5e/v6e/v7x


def _pick_hw_block(hw, other_steps, min_steps=4, max_block=1024):
    """Largest multiple-of-128 divisor of hw (<= max_block) that still yields
    >= min_steps total grid steps; hw itself if it is not 128-aligned."""
    if hw % 128 != 0:
        return hw
    best = 128
    for blk in range(128, min(max_block, hw) + 1, 128):
        if hw % blk:
            continue
        if blk == 128 or other_steps * (hw // blk) >= min_steps:
            best = blk
    return best


# ----------------------------------------------------------------------------
# Kernel 1: fused 3x3 conv as a single lane-dense matmul (taps folded into K)
# ----------------------------------------------------------------------------
def _conv3x3_kernel(taps_ref, w_ref, b_ref, o_ref):
    # taps_ref: (1, 1, 9*Cin, HWB)   w_ref: (1, Cout, 9*Cin)
    # b_ref:    (1, Cout, HWB) f32   o_ref: (1, 1, Cout, HWB)
    acc = lax.dot_general(w_ref[0], taps_ref[0, 0], _NN,
                          preferred_element_type=jnp.float32)
    o_ref[0, 0] = (acc + b_ref[0]).astype(o_ref.dtype)


def _conv3x3_cm(taps, wmat, bias_map, out_dtype):
    """taps: (nt, nb, 9*Cin, HW)  wmat: (nt, Cout, 9*Cin)
       bias_map: (nt, Cout, HW) f32  ->  (nt, nb, Cout, HW) channel-major."""
    nt, nb, k, hw = taps.shape
    cout = wmat.shape[1]
    hwb = _pick_hw_block(hw, nt * nb)
    return pl.pallas_call(
        _conv3x3_kernel,
        out_shape=jax.ShapeDtypeStruct((nt, nb, cout, hw), out_dtype),
        grid=(nt, nb, hw // hwb),
        in_specs=[
            pl.BlockSpec((1, 1, k, hwb), lambda t, i, s: (t, i, 0, s)),
            pl.BlockSpec((1, cout, k), lambda t, i, s: (t, 0, 0)),
            pl.BlockSpec((1, cout, hwb), lambda t, i, s: (t, 0, s)),
        ],
        out_specs=pl.BlockSpec((1, 1, cout, hwb), lambda t, i, s: (t, i, 0, s)),
        compiler_params=pltpu.CompilerParams(
            dimension_semantics=("parallel", "parallel", "parallel"),
            vmem_limit_bytes=_VMEM_LIMIT),
    )(taps, wmat, bias_map)


def _im2col_cm(x):
    """(..., C, H, W) -> (..., 9*C, H*W): zero-padded 3x3 taps (tap-major)
    folded into the contraction dim, channel-major / lane-dense columns."""
    *lead, c, h, w = x.shape
    xp = jnp.pad(x, [(0, 0)] * (len(lead) + 1) + [(1, 1), (1, 1)])
    taps = [xp[..., di:di + h, dj:dj + w] for di in range(3) for dj in range(3)]
    return jnp.stack(taps, axis=-4).reshape(*lead, 9 * c, h * w)


def _edge_mask(n):
    # mask[p, d] = 1.0 iff tap offset d (0..2) at output position p stays
    # inside [0, n) after the padding-1 shift, i.e. 0 <= p + d - 1 < n.
    p = jnp.arange(n)[:, None]
    d = jnp.arange(3)[None, :]
    return ((p + d - 1 >= 0) & (p + d - 1 < n)).astype(jnp.float32)


def _fuse_1x1_into_3x3(w1, b1, w3, b3, h, w):
    """Fold conv1x1 (w1,b1) followed by padded conv3x3 (w3,b3) into one 3x3
    conv: weight matrix (Cout, 9*Cin) + exact per-position bias map
    (Cout, H*W).  The bias map accounts for zero padding of the 1x1
    intermediate (border taps must not receive the 1x1 bias)."""
    cout = w3.shape[0]
    w1m = w1[:, :, 0, 0]                                     # (Cmid, Cin)
    wf = jnp.einsum("omij,mc->ocij", w3, w1m)                # (Cout, Cin, 3, 3)
    wmat = jnp.transpose(wf, (0, 2, 3, 1)).reshape(cout, -1)
    w3b1 = jnp.einsum("omij,m->oij", w3, b1)                 # (Cout, 3, 3)
    bmap = b3[:, None, None] + jnp.einsum(
        "oij,ai,bj->oab", w3b1, _edge_mask(h), _edge_mask(w))
    return wmat, bmap.reshape(cout, h * w).astype(jnp.float32)


def _plain_3x3(w3, b3, h, w):
    cout = w3.shape[0]
    wmat = jnp.transpose(w3, (0, 2, 3, 1)).reshape(cout, -1)
    bmap = jnp.broadcast_to(b3[:, None], (cout, h * w)).astype(jnp.float32)
    return wmat, bmap


# ----------------------------------------------------------------------------
# Kernel 2: dual-direction attention, grid over (batch, head), fused output
# ----------------------------------------------------------------------------
def _softmax_rows(logits, approx):
    m = jnp.max(logits, axis=-1, keepdims=True)
    e = jnp.exp(logits - m)
    s = jnp.sum(e, axis=-1, keepdims=True)
    if approx:
        return e * pl.reciprocal(s, approx=True)     # EUP, bf16 path only
    return e / s


def _attention_kernel(temp_ref, xq_ref, yk_ref, fv_ref, f2v_ref, o_ref, *,
                      approx_recip):
    # temp_ref: (1, 1, 1) f32          xq/yk/fv/f2v: (1, 1, cph, HW)
    # o_ref:    (1, 1, 2*cph, HW) -- rows [0, cph) = out_a, [cph, 2cph) = out_b
    cph = xq_ref.shape[2]
    cdt = fv_ref.dtype
    t = temp_ref[0]                                          # (1, 1), broadcasts

    xq = xq_ref[0, 0].astype(jnp.float32)                    # (cph, HW)
    yk = yk_ref[0, 0].astype(jnp.float32)

    # L2-normalize along the spatial dim (rsqrt on the EUP).
    eps2 = 1e-24                                             # == (1e-12)**2
    xn = xq * lax.rsqrt(jnp.maximum(jnp.sum(xq * xq, -1, keepdims=True), eps2))
    yn = yk * lax.rsqrt(jnp.maximum(jnp.sum(yk * yk, -1, keepdims=True), eps2))
    xn = xn.astype(cdt)
    yn = yn.astype(cdt)

    # Direction 1: attn  = softmax_j(t * <xn_i, yn_j>);  out_a = attn  @ f
    # Direction 2: attn2 = softmax_j(t * <yn_i, xn_j>);  out_b = attn2 @ f2
    logits1 = lax.dot_general(xn, yn, _NT, preferred_element_type=jnp.float32) * t
    logits2 = lax.dot_general(yn, xn, _NT, preferred_element_type=jnp.float32) * t
    p1 = _softmax_rows(logits1, approx_recip).astype(cdt)
    p2 = _softmax_rows(logits2, approx_recip).astype(cdt)

    out_a = lax.dot_general(p1, fv_ref[0, 0], _NN,
                            preferred_element_type=jnp.float32)
    out_b = lax.dot_general(p2, f2v_ref[0, 0], _NN,
                            preferred_element_type=jnp.float32)

    o_ref[0, 0, :cph, :] = out_a.astype(o_ref.dtype)
    o_ref[0, 0, cph:, :] = out_b.astype(o_ref.dtype)


def _attention_pallas(xq, yk, fv, f2v, temperature, *, out_dtype, approx_recip):
    # xq/yk/fv/f2v: (b, nh, cph, hw) head-major; temperature: (nh, 1, 1) f32.
    b, nh, cph, hw = xq.shape
    blk = pl.BlockSpec((1, 1, cph, hw), lambda i, hd: (i, hd, 0, 0))
    return pl.pallas_call(
        functools.partial(_attention_kernel, approx_recip=approx_recip),
        out_shape=jax.ShapeDtypeStruct((b, nh, 2 * cph, hw), out_dtype),
        grid=(b, nh),
        in_specs=[
            pl.BlockSpec((1, 1, 1), lambda i, hd: (hd, 0, 0)),
            blk, blk, blk, blk,
        ],
        out_specs=pl.BlockSpec((1, 1, 2 * cph, hw), lambda i, hd: (i, hd, 0, 0)),
        compiler_params=pltpu.CompilerParams(
            dimension_semantics=("parallel", "parallel"),
            vmem_limit_bytes=_VMEM_LIMIT),
    )(temperature, xq, yk, fv, f2v)


# ----------------------------------------------------------------------------
# Attention_fuse forward (4 pallas_calls total)
# ----------------------------------------------------------------------------
def attention_fuse_forward(params, x, y, f, *, num_heads,
                           compute_dtype=jnp.bfloat16):
    b, c, h, w = x.shape
    assert c % num_heads == 0
    cph = c // num_heads
    hw = h * w
    cdt = compute_dtype
    approx = jnp.dtype(cdt) != jnp.dtype(jnp.float32)

    # --- fold every 1x1 conv into its following 3x3 conv (wrapper-side) ---
    wx, bx = _fuse_1x1_into_3x3(params["x1_w"], params["x1_b"],
                                params["x3_w"], params["x3_b"], h, w)
    wy, by = _fuse_1x1_into_3x3(params["y1_w"], params["y1_b"],
                                params["y3_w"], params["y3_b"], h, w)
    wf, bf = _fuse_1x1_into_3x3(params["f1_w"], params["f1_b"],
                                params["f3_w"], params["f3_b"], h, w)
    w_xyf = jnp.stack([wx, wy, wf], 0).astype(cdt)           # (3, C, 9C)
    b_xyf = jnp.stack([bx, by, bf], 0)                       # (3, C, HW) f32

    w_f2, b_f2 = _fuse_1x1_into_3x3(params["f1_2_w"], params["f1_2_b"],
                                    params["f3_2_w"], params["f3_2_b"], h, w)
    w_f2, b_f2 = w_f2[None].astype(cdt), b_f2[None]

    # Projection conv: permute its input channels from the reference's concat
    # order [dir, head, cph] to the attention kernel's packing [head, dir, cph].
    wp = params["proj_w"].reshape(c, 2, num_heads, cph, 3, 3)
    wp = jnp.transpose(wp, (0, 2, 1, 3, 4, 5)).reshape(c, 2 * c, 3, 3)
    w_proj, b_proj = _plain_3x3(wp, params["proj_b"], h, w)
    w_proj, b_proj = w_proj[None].astype(cdt), b_proj[None]

    # --- branch convs: x / y / f share ONE pallas_call ---
    xyz = jnp.stack([x, y, f], axis=0).astype(cdt)           # (3, b, C, H, W)
    out_xyf = _conv3x3_cm(_im2col_cm(xyz), w_xyf, b_xyf, out_dtype=cdt)
    x_, y_, f_ = out_xyf[0], out_xyf[1], out_xyf[2]          # (b, C, HW) each

    # --- f2 branch (consumes the transformed f, as in the PyTorch code) ---
    f2_ = _conv3x3_cm(_im2col_cm(f_.reshape(b, c, h, w))[None],
                      w_f2, b_f2, out_dtype=cdt)[0]          # (b, C, HW)

    # --- dual-direction attention, fused (out_a | out_b) output ---
    def heads(t):                                            # free reshape
        return t.reshape(b, num_heads, cph, hw)

    att = _attention_pallas(
        heads(x_), heads(y_), heads(f_), heads(f2_),
        params["temperature"].reshape(num_heads, 1, 1).astype(jnp.float32),
        out_dtype=cdt, approx_recip=approx)                  # (b, nh, 2cph, HW)

    # --- projection conv (consumes the fused attention output directly) ---
    out = _conv3x3_cm(_im2col_cm(att.reshape(b, 2 * c, h, w))[None],
                      w_proj, b_proj, out_dtype=jnp.float32)[0]
    return out.reshape(b, c, h, w)                           # already NCHW


# ----------------------------------------------------------------------------
# Pure-JAX reference (direct translation of the PyTorch module)
# ----------------------------------------------------------------------------
def _ref_conv(x, w, b, pad):
    out = jax.lax.conv_general_dilated(
        x, w, window_strides=(1, 1), padding=[(pad, pad), (pad, pad)],
        dimension_numbers=("NCHW", "OIHW", "NCHW"))
    return out + b[None, :, None, None]


def reference_forward(params, x, y, f, *, num_heads):
    b, c, h, w = x.shape
    cph = c // num_heads
    x_ = _ref_conv(_ref_conv(x, params["x1_w"], params["x1_b"], 0),
                   params["x3_w"], params["x3_b"], 1)
    y_ = _ref_conv(_ref_conv(y, params["y1_w"], params["y1_b"], 0),
                   params["y3_w"], params["y3_b"], 1)
    f_ = _ref_conv(_ref_conv(f, params["f1_w"], params["f1_b"], 0),
                   params["f3_w"], params["f3_b"], 1)
    f2_ = _ref_conv(_ref_conv(f_, params["f1_2_w"], params["f1_2_b"], 0),
                    params["f3_2_w"], params["f3_2_b"], 1)

    def rearr(t):
        return t.reshape(b, num_heads, cph, h * w)

    xh, yh, fh, f2h = rearr(x_), rearr(y_), rearr(f_), rearr(f2_)
    eps = 1e-12
    xn = xh / jnp.maximum(jnp.linalg.norm(xh, axis=-1, keepdims=True), eps)
    yn = yh / jnp.maximum(jnp.linalg.norm(yh, axis=-1, keepdims=True), eps)
    temp = params["temperature"].reshape(1, num_heads, 1, 1)

    attn = jnp.einsum("bhcd,bhed->bhce", xn, yn) * temp
    attn = jax.nn.softmax(attn, axis=-1)
    out_a = jnp.einsum("bhce,bhed->bhcd", attn, fh).reshape(b, c, h, w)

    attn2 = jnp.einsum("bhcd,bhed->bhce", yn, xn) * temp
    attn2 = jax.nn.softmax(attn2, axis=-1)
    out_b = jnp.einsum("bhce,bhed->bhcd", attn2, f2h).reshape(b, c, h, w)

    out = jnp.concatenate([out_a, out_b], axis=1)
    return _ref_conv(out, params["proj_w"], params["proj_b"], 1)


# ----------------------------------------------------------------------------
# Deterministic parameter init (shapes follow the module __init__)
# ----------------------------------------------------------------------------
def init_params(key, dim, num_heads):
    names1x1 = ["x1", "y1", "f1", "f1_2"]
    names3x3 = ["x3", "y3", "f3", "f3_2"]
    params = {"temperature": jnp.ones((num_heads, 1, 1), jnp.float32)}
    keys = jax.random.split(key, 2 * (len(names1x1) + len(names3x3)) + 2)
    k = 0
    for n in names1x1:
        params[n + "_w"] = 0.1 * jax.random.normal(keys[k], (dim, dim, 1, 1), jnp.float32); k += 1
        params[n + "_b"] = 0.01 * jax.random.normal(keys[k], (dim,), jnp.float32); k += 1
    for n in names3x3:
        params[n + "_w"] = 0.1 * jax.random.normal(keys[k], (dim, dim, 3, 3), jnp.float32); k += 1
        params[n + "_b"] = 0.01 * jax.random.normal(keys[k], (dim,), jnp.float32); k += 1
    params["proj_w"] = 0.1 * jax.random.normal(keys[k], (dim, 2 * dim, 3, 3), jnp.float32); k += 1
    params["proj_b"] = 0.01 * jax.random.normal(keys[k], (dim,), jnp.float32)
    return params


if __name__ == "__main__":
    B, DIM, NUM_HEADS, H, W = 2, 8, 2, 16, 16

    root = jax.random.PRNGKey(0)
    kx, ky, kf, kp = jax.random.split(root, 4)
    x = jax.random.normal(kx, (B, DIM, H, W), jnp.float32)
    y = jax.random.normal(ky, (B, DIM, H, W), jnp.float32)
    f = jax.random.normal(kf, (B, DIM, H, W), jnp.float32)
    params = init_params(kp, DIM, NUM_HEADS)

    ref = reference_forward(params, x, y, f, num_heads=NUM_HEADS)

    # float32 compute path (exact softmax reciprocal).  Note the XLA reference
    # itself runs its matmuls/convs at TPU default (bf16-pass) precision, so a
    # moderately loose tolerance is used for the comparison.
    fwd32 = jax.jit(functools.partial(attention_fuse_forward,
                                      num_heads=NUM_HEADS,
                                      compute_dtype=jnp.float32))
    out32 = jax.block_until_ready(fwd32(params, x, y, f))
    assert out32.shape == (B, DIM, H, W), out32.shape
    assert bool(jnp.all(jnp.isfinite(out32)))
    assert bool(jnp.allclose(out32, ref, rtol=5e-2, atol=5e-2)), \
        ("f32 mismatch, max abs diff = %f" % float(jnp.max(jnp.abs(out32 - ref))))

    # bf16 compute path (default / MXU-native): looser tolerance.
    fwd16 = jax.jit(functools.partial(attention_fuse_forward,
                                      num_heads=NUM_HEADS,
                                      compute_dtype=jnp.bfloat16))
    out16 = jax.block_until_ready(fwd16(params, x, y, f))
    assert out16.shape == (B, DIM, H, W), out16.shape
    assert bool(jnp.all(jnp.isfinite(out16)))
    assert bool(jnp.allclose(out16, ref, rtol=1e-1, atol=1e-1)), \
        ("bf16 mismatch, max abs diff = %f" % float(jnp.max(jnp.abs(out16 - ref))))

    print("KERNEL_OK")
</pallas_src>

<mosaic_0001>
module attributes {stable_mosaic.version = 11 : i64} {
  func.func @_conv3x3_kernel(%arg0: i32, %arg1: i32, %arg2: i32, %arg3: memref<1x1x72x256xf32, #tpu.memory_space<vmem>>, %arg4: memref<1x8x72xf32, #tpu.memory_space<vmem>>, %arg5: memref<1x8x256xf32, #tpu.memory_space<vmem>>, %arg6: memref<1x1x8x256xf32, #tpu.memory_space<vmem>>) attributes {dimension_semantics = [#tpu.dimension_semantics<parallel>, #tpu.dimension_semantics<parallel>, #tpu.dimension_semantics<parallel>], iteration_bounds = array<i64: 3, 2, 1>, scalar_prefetch = 0 : i64, scratch_operands = 0 : i64, tpu.core_type = #tpu.core_type<tc>, window_params = [{transform_indices = @transform_0, window_bounds = array<i64: 1, 1, 72, 256>}, {transform_indices = @transform_1, window_bounds = array<i64: 1, 8, 72>}, {transform_indices = @transform_2, window_bounds = array<i64: 1, 8, 256>}, {transform_indices = @transform_3, window_bounds = array<i64: 1, 1, 8, 256>}]} {
    %c0 = arith.constant 0 : index
    %c0_0 = arith.constant 0 : index
    %c0_1 = arith.constant 0 : index
    %0 = vector.load %arg4[%c0, %c0_0, %c0_1] : memref<1x8x72xf32, #tpu.memory_space<vmem>>, vector<1x8x72xf32>
    %1 = vector.shape_cast %0 : vector<1x8x72xf32> to vector<8x72xf32>
    %c0_2 = arith.constant 0 : index
    %c0_3 = arith.constant 0 : index
    %c0_4 = arith.constant 0 : index
    %c0_5 = arith.constant 0 : index
    %2 = vector.load %arg3[%c0_2, %c0_3, %c0_4, %c0_5] : memref<1x1x72x256xf32, #tpu.memory_space<vmem>>, vector<1x1x72x256xf32>
    %3 = vector.shape_cast %2 : vector<1x1x72x256xf32> to vector<72x256xf32>
    %cst = arith.constant dense<0.000000e+00> : vector<8x256xf32>
    %4 = tpu.matmul %1, %3, %cst {dimension_numbers = #tpu.dot_dimension_numbers<[1], [0], [0], [1], [0, 0, 1, 1], [], []>} : vector<8x72xf32>, vector<72x256xf32>, vector<8x256xf32> -> vector<8x256xf32>
    %c0_6 = arith.constant 0 : index
    %c0_7 = arith.constant 0 : index
    %c0_8 = arith.constant 0 : index
    %5 = vector.load %arg5[%c0_6, %c0_7, %c0_8] : memref<1x8x256xf32, #tpu.memory_space<vmem>>, vector<1x8x256xf32>
    %6 = vector.shape_cast %5 : vector<1x8x256xf32> to vector<8x256xf32>
    %7 = arith.addf %4, %6 : vector<8x256xf32>
    %c0_9 = arith.constant 0 : index
    %c0_10 = arith.constant 0 : index
    %c0_11 = arith.constant 0 : index
    %c0_12 = arith.constant 0 : index
    %8 = vector.load %arg6[%c0_9, %c0_10, %c0_11, %c0_12] : memref<1x1x8x256xf32, #tpu.memory_space<vmem>>, vector<1x1x8x256xf32>
    %9 = vector.shape_cast %8 : vector<1x1x8x256xf32> to vector<8x256xf32>
    %10 = vector.shape_cast %7 : vector<8x256xf32> to vector<1x1x8x256xf32>
    tpu.vector_store %arg6[%c0_9, %c0_10, %c0_11, %c0_12], %10 {strides = array<i32>} : memref<1x1x8x256xf32, #tpu.memory_space<vmem>>, vector<1x1x8x256xf32>,
    return
  }
  func.func @transform_0(%arg0: i32, %arg1: i32, %arg2: i32) -> (i32, i32, i32, i32) {
    %c0_i32 = arith.constant 0 : i32
    %c0_i32_0 = arith.constant 0 : i32
    return %arg0, %arg1, %c0_i32, %arg2 : i32, i32, i32, i32
  }
  func.func @transform_1(%arg0: i32, %arg1: i32, %arg2: i32) -> (i32, i32, i32) {
    %c0_i32 = arith.constant 0 : i32
    %c0_i32_0 = arith.constant 0 : i32
    %c0_i32_1 = arith.constant 0 : i32
    return %arg0, %c0_i32, %c0_i32_0 : i32, i32, i32
  }
  func.func @transform_2(%arg0: i32, %arg1: i32, %arg2: i32) -> (i32, i32, i32) {
    %c0_i32 = arith.constant 0 : i32
    %c0_i32_0 = arith.constant 0 : i32
    return %arg0, %c0_i32, %arg2 : i32, i32, i32
  }
  func.func @transform_3(%arg0: i32, %arg1: i32, %arg2: i32) -> (i32, i32, i32, i32) {
    %c0_i32 = arith.constant 0 : i32
    %c0_i32_0 = arith.constant 0 : i32
    return %arg0, %arg1, %c0_i32, %arg2 : i32, i32, i32, i32
  }
}

module attributes {stable_mosaic.version = 11 : i64} {
  func.func @_conv3x3_kernel(%arg0: i32, %arg1: i32, %arg2: i32, %arg3: memref<1x1x72x128xf32, #tpu.memory_space<vmem>>, %arg4: memref<1x8x72xf32, #tpu.memory_space<vmem>>, %arg5: memref<1x8x128xf32, #tpu.memory_space<vmem>>, %arg6: memref<1x1x8x128xf32, #tpu.memory_space<vmem>>) attributes {dimension_semantics = [#tpu.dimension_semantics<parallel>, #tpu.dimension_semantics<parallel>, #tpu.dimension_semantics<parallel>], iteration_bounds = array<i64: 1, 2, 2>, scalar_prefetch = 0 : i64, scratch_operands = 0 : i64, tpu.core_type = #tpu.core_type<tc>, window_params = [{transform_indices = @transform_0, window_bounds = array<i64: 1, 1, 72, 128>}, {transform_indices = @transform_1, window_bounds = array<i64: 1, 8, 72>}, {transform_indices = @transform_2, window_bounds = array<i64: 1, 8, 128>}, {transform_indices = @transform_3, window_bounds = array<i64: 1, 1, 8, 128>}]} {
    %c0 = arith.constant 0 : index
    %c0_0 = arith.constant 0 : index
    %c0_1 = arith.constant 0 : index
    %0 = vector.load %arg4[%c0, %c0_0, %c0_1] : memref<1x8x72xf32, #tpu.memory_space<vmem>>, vector<1x8x72xf32>
    %1 = vector.shape_cast %0 : vector<1x8x72xf32> to vector<8x72xf32>
    %c0_2 = arith.constant 0 : index
    %c0_3 = arith.constant 0 : index
    %c0_4 = arith.constant 0 : index
    %c0_5 = arith.constant 0 : index
    %2 = vector.load %arg3[%c0_2, %c0_3, %c0_4, %c0_5] : memref<1x1x72x128xf32, #tpu.memory_space<vmem>>, vector<1x1x72x128xf32>
    %3 = vector.shape_cast %2 : vector<1x1x72x128xf32> to vector<72x128xf32>
    %cst = arith.constant dense<0.000000e+00> : vector<8x128xf32>
    %4 = tpu.matmul %1, %3, %cst {dimension_numbers = #tpu.dot_dimension_numbers<[1], [0], [0], [1], [0, 0, 1, 1], [], []>} : vector<8x72xf32>, vector<72x128xf32>, vector<8x128xf32> -> vector<8x128xf32>
    %c0_6 = arith.constant 0 : index
    %c0_7 = arith.constant 0 : index
    %c0_8 = arith.constant 0 : index
    %5 = vector.load %arg5[%c0_6, %c0_7, %c0_8] : memref<1x8x128xf32, #tpu.memory_space<vmem>>, vector<1x8x128xf32>
    %6 = vector.shape_cast %5 : vector<1x8x128xf32> to vector<8x128xf32>
    %7 = arith.addf %4, %6 : vector<8x128xf32>
    %c0_9 = arith.constant 0 : index
    %c0_10 = arith.constant 0 : index
    %c0_11 = arith.constant 0 : index
    %c0_12 = arith.constant 0 : index
    %8 = vector.load %arg6[%c0_9, %c0_10, %c0_11, %c0_12] : memref<1x1x8x128xf32, #tpu.memory_space<vmem>>, vector<1x1x8x128xf32>
    %9 = vector.shape_cast %8 : vector<1x1x8x128xf32> to vector<8x128xf32>
    %10 = vector.shape_cast %7 : vector<8x128xf32> to vector<1x1x8x128xf32>
    tpu.vector_store %arg6[%c0_9, %c0_10, %c0_11, %c0_12], %10 {strides = array<i32>} : memref<1x1x8x128xf32, #tpu.memory_space<vmem>>, vector<1x1x8x128xf32>,
    return
  }
  func.func @transform_0(%arg0: i32, %arg1: i32, %arg2: i32) -> (i32, i32, i32, i32) {
    %c0_i32 = arith.constant 0 : i32
    %c0_i32_0 = arith.constant 0 : i32
    return %arg0, %arg1, %c0_i32, %arg2 : i32, i32, i32, i32
  }
  func.func @transform_1(%arg0: i32, %arg1: i32, %arg2: i32) -> (i32, i32, i32) {
    %c0_i32 = arith.constant 0 : i32
    %c0_i32_0 = arith.constant 0 : i32
    %c0_i32_1 = arith.constant 0 : i32
    return %arg0, %c0_i32, %c0_i32_0 : i32, i32, i32
  }
  func.func @transform_2(%arg0: i32, %arg1: i32, %arg2: i32) -> (i32, i32, i32) {
    %c0_i32 = arith.constant 0 : i32
    %c0_i32_0 = arith.constant 0 : i32
    return %arg0, %c0_i32, %arg2 : i32, i32, i32
  }
  func.func @transform_3(%arg0: i32, %arg1: i32, %arg2: i32) -> (i32, i32, i32, i32) {
    %c0_i32 = arith.constant 0 : i32
    %c0_i32_0 = arith.constant 0 : i32
    return %arg0, %arg1, %c0_i32, %arg2 : i32, i32, i32, i32
  }
}

module attributes {stable_mosaic.version = 11 : i64} {
  func.func @_attention_kernel(%arg0: i32, %arg1: i32, %arg2: memref<1x1x1xf32, #tpu.memory_space<vmem>>, %arg3: memref<1x1x4x256xf32, #tpu.memory_space<vmem>>, %arg4: memref<1x1x4x256xf32, #tpu.memory_space<vmem>>, %arg5: memref<1x1x4x256xf32, #tpu.memory_space<vmem>>, %arg6: memref<1x1x4x256xf32, #tpu.memory_space<vmem>>, %arg7: memref<1x1x8x256xf32, #tpu.memory_space<vmem>>) attributes {dimension_semantics = [#tpu.dimension_semantics<parallel>, #tpu.dimension_semantics<parallel>], iteration_bounds = array<i64: 2, 2>, scalar_prefetch = 0 : i64, scratch_operands = 0 : i64, tpu.core_type = #tpu.core_type<tc>, window_params = [{transform_indices = @transform_0, window_bounds = array<i64: 1, 1, 1>}, {transform_indices = @transform_1, window_bounds = array<i64: 1, 1, 4, 256>}, {transform_indices = @transform_2, window_bounds = array<i64: 1, 1, 4, 256>}, {transform_indices = @transform_3, window_bounds = array<i64: 1, 1, 4, 256>}, {transform_indices = @transform_4, window_bounds = array<i64: 1, 1, 4, 256>}, {transform_indices = @transform_5, window_bounds = array<i64: 1, 1, 8, 256>}]} {
    %c0 = arith.constant 0 : index
    %c0_0 = arith.constant 0 : index
    %c0_1 = arith.constant 0 : index
    %0 = vector.load %arg2[%c0, %c0_0, %c0_1] : memref<1x1x1xf32, #tpu.memory_space<vmem>>, vector<1x1x1xf32>
    %1 = vector.shape_cast %0 : vector<1x1x1xf32> to vector<1x1xf32>
    %c0_2 = arith.constant 0 : index
    %c0_3 = arith.constant 0 : index
    %c0_4 = arith.constant 0 : index
    %c0_5 = arith.constant 0 : index
    %2 = vector.load %arg3[%c0_2, %c0_3, %c0_4, %c0_5] : memref<1x1x4x256xf32, #tpu.memory_space<vmem>>, vector<1x1x4x256xf32>
    %3 = vector.shape_cast %2 : vector<1x1x4x256xf32> to vector<4x256xf32>
    %c0_6 = arith.constant 0 : index
    %c0_7 = arith.constant 0 : index
    %c0_8 = arith.constant 0 : index
    %c0_9 = arith.constant 0 : index
    %4 = vector.load %arg4[%c0_6, %c0_7, %c0_8, %c0_9] : memref<1x1x4x256xf32, #tpu.memory_space<vmem>>, vector<1x1x4x256xf32>
    %5 = vector.shape_cast %4 : vector<1x1x4x256xf32> to vector<4x256xf32>
    %6 = arith.mulf %3, %3 : vector<4x256xf32>
    %cst = arith.constant dense<0.000000e+00> : vector<4xf32>
    %7 = vector.multi_reduction <add>, %6, %cst [1] : vector<4x256xf32> to vector<4xf32>
    %8 = vector.shape_cast %7 : vector<4xf32> to vector<4x1xf32>
    %cst_10 = arith.constant 1.000000e-24 : f32
    %9 = vector.broadcast %cst_10 : f32 to vector<4x1xf32>
    %10 = arith.maximumf %8, %9 : vector<4x1xf32>
    %11 = math.rsqrt %10 : vector<4x1xf32>
    %12 = vector.broadcast %11 : vector<4x1xf32> to vector<4x256xf32>
    %13 = arith.mulf %3, %12 : vector<4x256xf32>
    %14 = arith.mulf %5, %5 : vector<4x256xf32>
    %cst_11 = arith.constant dense<0.000000e+00> : vector<4xf32>
    %15 = vector.multi_reduction <add>, %14, %cst_11 [1] : vector<4x256xf32> to vector<4xf32>
    %16 = vector.shape_cast %15 : vector<4xf32> to vector<4x1xf32>
    %cst_12 = arith.constant 1.000000e-24 : f32
    %17 = vector.broadcast %cst_12 : f32 to vector<4x1xf32>
    %18 = arith.maximumf %16, %17 : vector<4x1xf32>
    %19 = math.rsqrt %18 : vector<4x1xf32>
    %20 = vector.broadcast %19 : vector<4x1xf32> to vector<4x256xf32>
    %21 = arith.mulf %5, %20 : vector<4x256xf32>
    %cst_13 = arith.constant dense<0.000000e+00> : vector<4x4xf32>
    %22 = tpu.matmul %13, %21, %cst_13 {dimension_numbers = #tpu.dot_dimension_numbers<[1], [1], [0], [0], [0, 0, 1, 0], [], []>} : vector<4x256xf32>, vector<4x256xf32>, vector<4x4xf32> -> vector<4x4xf32>
    %23 = vector.broadcast %1 : vector<1x1xf32> to vector<4x4xf32>
    %24 = arith.mulf %22, %23 : vector<4x4xf32>
    %cst_14 = arith.constant dense<0.000000e+00> : vector<4x4xf32>
    %25 = tpu.matmul %21, %13, %cst_14 {dimension_numbers = #tpu.dot_dimension_numbers<[1], [1], [0], [0], [0, 0, 1, 0], [], []>} : vector<4x256xf32>, vector<4x256xf32>, vector<4x4xf32> -> vector<4x4xf32>
    %26 = vector.broadcast %1 : vector<1x1xf32> to vector<4x4xf32>
    %27 = arith.mulf %25, %26 : vector<4x4xf32>
    %cst_15 = arith.constant dense<0xFF800000> : vector<4xf32>
    %28 = vector.multi_reduction <maximumf>, %24, %cst_15 [1] : vector<4x4xf32> to vector<4xf32>
    %29 = vector.shape_cast %28 : vector<4xf32> to vector<4x1xf32>
    %30 = vector.broadcast %29 : vector<4x1xf32> to vector<4x4xf32>
    %31 = arith.subf %24, %30 : vector<4x4xf32>
    %32 = math.exp %31 : vector<4x4xf32>
    %cst_16 = arith.constant dense<0.000000e+00> : vector<4xf32>
    %33 = vector.multi_reduction <add>, %32, %cst_16 [1] : vector<4x4xf32> to vector<4xf32>
    %34 = vector.shape_cast %33 : vector<4xf32> to vector<4x1xf32>
    %35 = vector.broadcast %34 : vector<4x1xf32> to vector<4x4xf32>
    %36 = arith.divf %32, %35 : vector<4x4xf32>
    %cst_17 = arith.constant dense<0xFF800000> : vector<4xf32>
    %37 = vector.multi_reduction <maximumf>, %27, %cst_17 [1] : vector<4x4xf32> to vector<4xf32>
    %38 = vector.shape_cast %37 : vector<4xf32> to vector<4x1xf32>
    %39 = vector.broadcast %38 : vector<4x1xf32> to vector<4x4xf32>
    %40 = arith.subf %27, %39 : vector<4x4xf32>
    %41 = math.exp %40 : vector<4x4xf32>
    %cst_18 = arith.constant dense<0.000000e+00> : vector<4xf32>
    %42 = vector.multi_reduction <add>, %41, %cst_18 [1] : vector<4x4xf32> to vector<4xf32>
    %43 = vector.shape_cast %42 : vector<4xf32> to vector<4x1xf32>
    %44 = vector.broadcast %43 : vector<4x1xf32> to vector<4x4xf32>
    %45 = arith.divf %41, %44 : vector<4x4xf32>
    %c0_19 = arith.constant 0 : index
    %c0_20 = arith.constant 0 : index
    %c0_21 = arith.constant 0 : index
    %c0_22 = arith.constant 0 : index
    %46 = vector.load %arg5[%c0_19, %c0_20, %c0_21, %c0_22] : memref<1x1x4x256xf32, #tpu.memory_space<vmem>>, vector<1x1x4x256xf32>
    %47 = vector.shape_cast %46 : vector<1x1x4x256xf32> to vector<4x256xf32>
    %cst_23 = arith.constant dense<0.000000e+00> : vector<4x256xf32>
    %48 = tpu.matmul %36, %47, %cst_23 {dimension_numbers = #tpu.dot_dimension_numbers<[1], [0], [0], [1], [0, 0, 1, 1], [], []>} : vector<4x4xf32>, vector<4x256xf32>, vector<4x256xf32> -> vector<4x256xf32>
    %c0_24 = arith.constant 0 : index
    %c0_25 = arith.constant 0 : index
    %c0_26 = arith.constant 0 : index
    %c0_27 = arith.constant 0 : index
    %49 = vector.load %arg6[%c0_24, %c0_25, %c0_26, %c0_27] : memref<1x1x4x256xf32, #tpu.memory_space<vmem>>, vector<1x1x4x256xf32>
    %50 = vector.shape_cast %49 : vector<1x1x4x256xf32> to vector<4x256xf32>
    %cst_28 = arith.constant dense<0.000000e+00> : vector<4x256xf32>
    %51 = tpu.matmul %45, %50, %cst_28 {dimension_numbers = #tpu.dot_dimension_numbers<[1], [0], [0], [1], [0, 0, 1, 1], [], []>} : vector<4x4xf32>, vector<4x256xf32>, vector<4x256xf32> -> vector<4x256xf32>
    %c0_29 = arith.constant 0 : index
    %c0_30 = arith.constant 0 : index
    %c0_31 = arith.constant 0 : index
    %c0_32 = arith.constant 0 : index
    %52 = vector.load %arg7[%c0_29, %c0_30, %c0_31, %c0_32] : memref<1x1x8x256xf32, #tpu.memory_space<vmem>>, vector<1x1x4x256xf32>
    %53 = vector.shape_cast %52 : vector<1x1x4x256xf32> to vector<4x256xf32>
    %54 = vector.shape_cast %48 : vector<4x256xf32> to vector<1x1x4x256xf32>
    tpu.vector_store %arg7[%c0_29, %c0_30, %c0_31, %c0_32], %54 {strides = array<i32>} : memref<1x1x8x256xf32, #tpu.memory_space<vmem>>, vector<1x1x4x256xf32>,
    %c0_33 = arith.constant 0 : index
    %c0_34 = arith.constant 0 : index
    %c4 = arith.constant 4 : index
    %c0_35 = arith.constant 0 : index
    %55 = vector.load %arg7[%c0_33, %c0_34, %c4, %c0_35] : memref<1x1x8x256xf32, #tpu.memory_space<vmem>>, vector<1x1x4x256xf32>
    %56 = vector.shape_cast %55 : vector<1x1x4x256xf32> to vector<4x256xf32>
    %57 = vector.shape_cast %51 : vector<4x256xf32> to vector<1x1x4x256xf32>
    tpu.vector_store %arg7[%c0_33, %c0_34, %c4, %c0_35], %57 {strides = array<i32>} : memref<1x1x8x256xf32, #tpu.memory_space<vmem>>, vector<1x1x4x256xf32>,
    return
  }
  func.func @transform_0(%arg0: i32, %arg1: i32) -> (i32, i32, i32) {
    %c0_i32 = arith.constant 0 : i32
    %c0_i32_0 = arith.constant 0 : i32
    %c0_i32_1 = arith.constant 0 : i32
    return %arg1, %c0_i32, %c0_i32_0 : i32, i32, i32
  }
  func.func @transform_1(%arg0: i32, %arg1: i32) -> (i32, i32, i32, i32) {
    %c0_i32 = arith.constant 0 : i32
    %c0_i32_0 = arith.constant 0 : i32
    %c0_i32_1 = arith.constant 0 : i32
    return %arg0, %arg1, %c0_i32, %c0_i32_0 : i32, i32, i32, i32
  }
  func.func @transform_2(%arg0: i32, %arg1: i32) -> (i32, i32, i32, i32) {
    %c0_i32 = arith.constant 0 : i32
    %c0_i32_0 = arith.constant 0 : i32
    %c0_i32_1 = arith.constant 0 : i32
    return %arg0, %arg1, %c0_i32, %c0_i32_0 : i32, i32, i32, i32
  }
  func.func @transform_3(%arg0: i32, %arg1: i32) -> (i32, i32, i32, i32) {
    %c0_i32 = arith.constant 0 : i32
    %c0_i32_0 = arith.constant 0 : i32
    %c0_i32_1 = arith.constant 0 : i32
    return %arg0, %arg1, %c0_i32, %c0_i32_0 : i32, i32, i32, i32
  }
  func.func @transform_4(%arg0: i32, %arg1: i32) -> (i32, i32, i32, i32) {
    %c0_i32 = arith.constant 0 : i32
    %c0_i32_0 = arith.constant 0 : i32
    %c0_i32_1 = arith.constant 0 : i32
    return %arg0, %arg1, %c0_i32, %c0_i32_0 : i32, i32, i32, i32
  }
  func.func @transform_5(%arg0: i32, %arg1: i32) -> (i32, i32, i32, i32) {
    %c0_i32 = arith.constant 0 : i32
    %c0_i32_0 = arith.constant 0 : i32
    %c0_i32_1 = arith.constant 0 : i32
    return %arg0, %arg1, %c0_i32, %c0_i32_0 : i32, i32, i32, i32
  }
}

module attributes {stable_mosaic.version = 11 : i64} {
  func.func @_conv3x3_kernel(%arg0: i32, %arg1: i32, %arg2: i32, %arg3: memref<1x1x144x128xf32, #tpu.memory_space<vmem>>, %arg4: memref<1x8x144xf32, #tpu.memory_space<vmem>>, %arg5: memref<1x8x128xf32, #tpu.memory_space<vmem>>, %arg6: memref<1x1x8x128xf32, #tpu.memory_space<vmem>>) attributes {dimension_semantics = [#tpu.dimension_semantics<parallel>, #tpu.dimension_semantics<parallel>, #tpu.dimension_semantics<parallel>], iteration_bounds = array<i64: 1, 2, 2>, scalar_prefetch = 0 : i64, scratch_operands = 0 : i64, tpu.core_type = #tpu.core_type<tc>, window_params = [{transform_indices = @transform_0, window_bounds = array<i64: 1, 1, 144, 128>}, {transform_indices = @transform_1, window_bounds = array<i64: 1, 8, 144>}, {transform_indices = @transform_2, window_bounds = array<i64: 1, 8, 128>}, {transform_indices = @transform_3, window_bounds = array<i64: 1, 1, 8, 128>}]} {
    %c0 = arith.constant 0 : index
    %c0_0 = arith.constant 0 : index
    %c0_1 = arith.constant 0 : index
    %0 = vector.load %arg4[%c0, %c0_0, %c0_1] : memref<1x8x144xf32, #tpu.memory_space<vmem>>, vector<1x8x144xf32>
    %1 = vector.shape_cast %0 : vector<1x8x144xf32> to vector<8x144xf32>
    %c0_2 = arith.constant 0 : index
    %c0_3 = arith.constant 0 : index
    %c0_4 = arith.constant 0 : index
    %c0_5 = arith.constant 0 : index
    %2 = vector.load %arg3[%c0_2, %c0_3, %c0_4, %c0_5] : memref<1x1x144x128xf32, #tpu.memory_space<vmem>>, vector<1x1x144x128xf32>
    %3 = vector.shape_cast %2 : vector<1x1x144x128xf32> to vector<144x128xf32>
    %cst = arith.constant dense<0.000000e+00> : vector<8x128xf32>
    %4 = tpu.matmul %1, %3, %cst {dimension_numbers = #tpu.dot_dimension_numbers<[1], [0], [0], [1], [0, 0, 1, 1], [], []>} : vector<8x144xf32>, vector<144x128xf32>, vector<8x128xf32> -> vector<8x128xf32>
    %c0_6 = arith.constant 0 : index
    %c0_7 = arith.constant 0 : index
    %c0_8 = arith.constant 0 : index
    %5 = vector.load %arg5[%c0_6, %c0_7, %c0_8] : memref<1x8x128xf32, #tpu.memory_space<vmem>>, vector<1x8x128xf32>
    %6 = vector.shape_cast %5 : vector<1x8x128xf32> to vector<8x128xf32>
    %7 = arith.addf %4, %6 : vector<8x128xf32>
    %c0_9 = arith.constant 0 : index
    %c0_10 = arith.constant 0 : index
    %c0_11 = arith.constant 0 : index
    %c0_12 = arith.constant 0 : index
    %8 = vector.load %arg6[%c0_9, %c0_10, %c0_11, %c0_12] : memref<1x1x8x128xf32, #tpu.memory_space<vmem>>, vector<1x1x8x128xf32>
    %9 = vector.shape_cast %8 : vector<1x1x8x128xf32> to vector<8x128xf32>
    %10 = vector.shape_cast %7 : vector<8x128xf32> to vector<1x1x8x128xf32>
    tpu.vector_store %arg6[%c0_9, %c0_10, %c0_11, %c0_12], %10 {strides = array<i32>} : memref<1x1x8x128xf32, #tpu.memory_space<vmem>>, vector<1x1x8x128xf32>,
    return
  }
  func.func @transform_0(%arg0: i32, %arg1: i32, %arg2: i32) -> (i32, i32, i32, i32) {
    %c0_i32 = arith.constant 0 : i32
    %c0_i32_0 = arith.constant 0 : i32
    return %arg0, %arg1, %c0_i32, %arg2 : i32, i32, i32, i32
  }
  func.func @transform_1(%arg0: i32, %arg1: i32, %arg2: i32) -> (i32, i32, i32) {
    %c0_i32 = arith.constant 0 : i32
    %c0_i32_0 = arith.constant 0 : i32
    %c0_i32_1 = arith.constant 0 : i32
    return %arg0, %c0_i32, %c0_i32_0 : i32, i32, i32
  }
  func.func @transform_2(%arg0: i32, %arg1: i32, %arg2: i32) -> (i32, i32, i32) {
    %c0_i32 = arith.constant 0 : i32
    %c0_i32_0 = arith.constant 0 : i32
    return %arg0, %c0_i32, %arg2 : i32, i32, i32
  }
  func.func @transform_3(%arg0: i32, %arg1: i32, %arg2: i32) -> (i32, i32, i32, i32) {
    %c0_i32 = arith.constant 0 : i32
    %c0_i32_0 = arith.constant 0 : i32
    return %arg0, %arg1, %c0_i32, %arg2 : i32, i32, i32, i32
  }
}

</mosaic_0001>

<bundles_post_ra>
// kernel: squeeze.14
= control target key start
LH: loop header
LB: loop body
LE: loop exit
PB: predicated region body
PF: predicated region fallthrough
CT: control target
= control target key end

     0   :  { %s385_s10 = smov 112   ;;  %s386_s15 = smov 96   ;;  %vm3_vm0 = vcmask 130048   ;;  %s714_s0 = inlined_call_operand.vmem [shape: f32[1,2,8,256], index: 0, kind: input, shape index: {}]   ;;  %s715_s1 = inlined_call_operand.vmem [shape: f32[2,8,16,16], index: 1, kind: output, shape index: {}]  }
   0x1   :  { %v306_v0 = vld.sshfl [vmem:[%s714_s0 + $0x10] sm:$0xff pattern:$0xb3a29180]   ;;  %v41_v1 = vld.sshfl [vmem:[%s714_s0] sm:$0xff pattern:$0xb3a29180]  }
   0x2   :  { %60 = vrot.lane.b32.xlu1 %v306_v0, %s385_s10  ;;  %42 = vrot.lane.b32.xlu0 %v41_v1, %s385_s10  ;;  %v309_v2 = vld.sshfl [vmem:[%s714_s0 + $0x14] sm:$0xff pattern:$0xb3a29180]   ;;  %v303_v3 = vld.sshfl [vmem:[%s714_s0 + $0x4] sm:$0xff pattern:$0xb3a29180]  }
   0x3   :  { %s387_s16 = smov 80   ;;  %s388_s17 = smov 64   ;;  %v2_v4 = vld [vmem:[%s714_s0] sm:$0xff]   ;;  %v286_v5 = vld [vmem:[%s714_s0 + $0x8] sm:$0xff]   ;;  %v291_v6 = vld [vmem:[%s714_s0 + $0x10] sm:$0xff]  }
   0x4   :  { %s389_s18 = smov 48   ;;  %4 = vst.msk [vmem:[%s715_s1] ss:$16 sm:$0x3] %vm3_vm0, %v2_v4   ;;  %v296_v7 = vld [vmem:[%s714_s0 + $0x18] sm:$0xff]   ;;  %s390_s0 = smov 32  }
   0x5   :  { %5 = vst.msk [vmem:[%s715_s1] ss:$16 sm:$0xc] %vm3_vm0, %v2_v4   ;;  %6 = vst.msk [vmem:[%s715_s1] ss:$16 sm:$0x30] %vm3_vm0, %v2_v4  }
   0x6   :  { %69 = vrot.lane.b32.xlu1 %v309_v2, %s385_s10  ;;  %51 = vrot.lane.b32.xlu0 %v303_v3, %s385_s10  ;;  %7 = vst.msk [vmem:[%s715_s1] ss:$16 sm:$0xc0] %vm3_vm0, %v2_v4   ;;  %287 = vst.msk [vmem:[%s715_s1 + $0x8] ss:$16 sm:$0x3] %vm3_vm0, %v286_v5  }
   0x7   :  { %288 = vst.msk [vmem:[%s715_s1 + $0x8] ss:$16 sm:$0xc] %vm3_vm0, %v286_v5   ;;  %289 = vst.msk [vmem:[%s715_s1 + $0x8] ss:$16 sm:$0x30] %vm3_vm0, %v286_v5  }
   0x8   :  { %290 = vst.msk [vmem:[%s715_s1 + $0x8] ss:$16 sm:$0xc0] %vm3_vm0, %v286_v5   ;;  %292 = vst.msk [vmem:[%s715_s1 + $0x80] ss:$16 sm:$0x3] %vm3_vm0, %v291_v6  }
   0x9   :  { %293 = vst.msk [vmem:[%s715_s1 + $0x80] ss:$16 sm:$0xc] %vm3_vm0, %v291_v6   ;;  %294 = vst.msk [vmem:[%s715_s1 + $0x80] ss:$16 sm:$0x30] %vm3_vm0, %v291_v6  }
   0xa   :  { %86 = vrot.lane.b32.xlu1 %v303_v3, %s386_s15  ;;  %77 = vrot.lane.b32.xlu0 %v41_v1, %s386_s15  ;;  %295 = vst.msk [vmem:[%s715_s1 + $0x80] ss:$16 sm:$0xc0] %vm3_vm0, %v291_v6   ;;  %297 = vst.msk [vmem:[%s715_s1 + $0x88] ss:$16 sm:$0x3] %vm3_vm0, %v296_v7  }
   0xb   :  { %298 = vst.msk [vmem:[%s715_s1 + $0x88] ss:$16 sm:$0xc] %vm3_vm0, %v296_v7   ;;  %299 = vst.msk [vmem:[%s715_s1 + $0x88] ss:$16 sm:$0x30] %vm3_vm0, %v296_v7  }
   0xc   :  { %300 = vst.msk [vmem:[%s715_s1 + $0x88] ss:$16 sm:$0xc0] %vm3_vm0, %v296_v7   ;;  %s391_s30 = smov 16  }
   0xe   :  { %104 = vrot.lane.b32.xlu1 %v309_v2, %s386_s15  ;;  %95 = vrot.lane.b32.xlu0 %v306_v0, %s386_s15 }
  0x12   :  { %121 = vrot.lane.b32.xlu1 %v303_v3, %s387_s16  ;;  %112 = vrot.lane.b32.xlu0 %v41_v1, %s387_s16 }
  0x16   :  { %139 = vrot.lane.b32.xlu1 %v309_v2, %s387_s16  ;;  %130 = vrot.lane.b32.xlu0 %v306_v0, %s387_s16 }
  0x1a   :  { %156 = vrot.lane.b32.xlu1 %v303_v3, %s388_s17  ;;  %147 = vrot.lane.b32.xlu0 %v41_v1, %s388_s17 }
  0x1e   :  { %174 = vrot.lane.b32.xlu1 %v309_v2, %s388_s17  ;;  %165 = vrot.lane.b32.xlu0 %v306_v0, %s388_s17 }
  0x22   :  { %191 = vrot.lane.b32.xlu1 %v303_v3, %s389_s18  ;;  %182 = vrot.lane.b32.xlu0 %v41_v1, %s389_s18 }
  0x26   :  { %209 = vrot.lane.b32.xlu1 %v309_v2, %s389_s18  ;;  %200 = vrot.lane.b32.xlu0 %v306_v0, %s389_s18 }
  0x2a   :  { %226 = vrot.lane.b32.xlu1 %v303_v3, %s390_s0  ;;  %217 = vrot.lane.b32.xlu0 %v41_v1, %s390_s0 }
  0x2e   :  { %244 = vrot.lane.b32.xlu1 %v309_v2, %s390_s0  ;;  %235 = vrot.lane.b32.xlu0 %v306_v0, %s390_s0 }
  0x32   :  { %261 = vrot.lane.b32.xlu1 %v303_v3, %s391_s30  ;;  %252 = vrot.lane.b32.xlu0 %v41_v1, %s391_s30 }
  0x36   :  { %279 = vrot.lane.b32.xlu1 %v309_v2, %s391_s30  ;;  %270 = vrot.lane.b32.xlu0 %v306_v0, %s391_s30 }
  0x74   :  { %v61_v8 = vpop.permute.xlu1 %60   ;;  %v43_v9 = vpop.permute.xlu0 %42  }
  0x75   :  { %307 = vst.msk [vmem:[%s715_s1 + $0x81] ss:$8 sm:$0xf] %vm3_vm0, %v61_v8   ;;  %308 = vst.msk [vmem:[%s715_s1 + $0x81] ss:$8 sm:$0xf0] %vm3_vm0, %v61_v8  }
  0x76   :  { %301 = vst.msk [vmem:[%s715_s1 + $0x1] ss:$8 sm:$0xf] %vm3_vm0, %v43_v9   ;;  %302 = vst.msk [vmem:[%s715_s1 + $0x1] ss:$8 sm:$0xf0] %vm3_vm0, %v43_v9  }
  0x78   :  { %v70_v10 = vpop.permute.xlu1 %69   ;;  %v52_v11 = vpop.permute.xlu0 %51  }
  0x79   :  { %310 = vst.msk [vmem:[%s715_s1 + $0xc1] ss:$8 sm:$0xf] %vm3_vm0, %v70_v10   ;;  %311 = vst.msk [vmem:[%s715_s1 + $0xc1] ss:$8 sm:$0xf0] %vm3_vm0, %v70_v10  }
  0x7a   :  { %304 = vst.msk [vmem:[%s715_s1 + $0x41] ss:$8 sm:$0xf] %vm3_vm0, %v52_v11   ;;  %305 = vst.msk [vmem:[%s715_s1 + $0x41] ss:$8 sm:$0xf0] %vm3_vm0, %v52_v11  }
  0x7c   :  { %v87_v12 = vpop.permute.xlu1 %86   ;;  %v78_v13 = vpop.permute.xlu0 %77  }
  0x7d   :  { %315 = vst.msk [vmem:[%s715_s1 + $0x42] ss:$8 sm:$0xf] %vm3_vm0, %v87_v12   ;;  %316 = vst.msk [vmem:[%s715_s1 + $0x42] ss:$8 sm:$0xf0] %vm3_vm0, %v87_v12  }
  0x7e   :  { %312 = vst.msk [vmem:[%s715_s1 + $0x2] ss:$8 sm:$0xf] %vm3_vm0, %v78_v13   ;;  %313 = vst.msk [vmem:[%s715_s1 + $0x2] ss:$8 sm:$0xf0] %vm3_vm0, %v78_v13  }
  0x80   :  { %v105_v14 = vpop.permute.xlu1 %104   ;;  %v96_v15 = vpop.permute.xlu0 %95  }
  0x81   :  { %321 = vst.msk [vmem:[%s715_s1 + $0xc2] ss:$8 sm:$0xf] %vm3_vm0, %v105_v14   ;;  %322 = vst.msk [vmem:[%s715_s1 + $0xc2] ss:$8 sm:$0xf0] %vm3_vm0, %v105_v14  }
  0x82   :  { %318 = vst.msk [vmem:[%s715_s1 + $0x82] ss:$8 sm:$0xf] %vm3_vm0, %v96_v15   ;;  %319 = vst.msk [vmem:[%s715_s1 + $0x82] ss:$8 sm:$0xf0] %vm3_vm0, %v96_v15  }
  0x84   :  { %v122_v16 = vpop.permute.xlu1 %121   ;;  %v113_v17 = vpop.permute.xlu0 %112  }
  0x85   :  { %326 = vst.msk [vmem:[%s715_s1 + $0x43] ss:$8 sm:$0xf] %vm3_vm0, %v122_v16   ;;  %327 = vst.msk [vmem:[%s715_s1 + $0x43] ss:$8 sm:$0xf0] %vm3_vm0, %v122_v16  }
  0x86   :  { %323 = vst.msk [vmem:[%s715_s1 + $0x3] ss:$8 sm:$0xf] %vm3_vm0, %v113_v17   ;;  %324 = vst.msk [vmem:[%s715_s1 + $0x3] ss:$8 sm:$0xf0] %vm3_vm0, %v113_v17  }
  0x88   :  { %v140_v18 = vpop.permute.xlu1 %139   ;;  %v131_v19 = vpop.permute.xlu0 %130  }
  0x89   :  { %332 = vst.msk [vmem:[%s715_s1 + $0xc3] ss:$8 sm:$0xf] %vm3_vm0, %v140_v18   ;;  %333 = vst.msk [vmem:[%s715_s1 + $0xc3] ss:$8 sm:$0xf0] %vm3_vm0, %v140_v18  }
  0x8a   :  { %329 = vst.msk [vmem:[%s715_s1 + $0x83] ss:$8 sm:$0xf] %vm3_vm0, %v131_v19   ;;  %330 = vst.msk [vmem:[%s715_s1 + $0x83] ss:$8 sm:$0xf0] %vm3_vm0, %v131_v19  }
  0x8c   :  { %v157_v20 = vpop.permute.xlu1 %156   ;;  %v148_v21 = vpop.permute.xlu0 %147  }
  0x8d   :  { %337 = vst.msk [vmem:[%s715_s1 + $0x44] ss:$8 sm:$0xf] %vm3_vm0, %v157_v20   ;;  %338 = vst.msk [vmem:[%s715_s1 + $0x44] ss:$8 sm:$0xf0] %vm3_vm0, %v157_v20  }
  0x8e   :  { %334 = vst.msk [vmem:[%s715_s1 + $0x4] ss:$8 sm:$0xf] %vm3_vm0, %v148_v21   ;;  %335 = vst.msk [vmem:[%s715_s1 + $0x4] ss:$8 sm:$0xf0] %vm3_vm0, %v148_v21  }
  0x90   :  { %v175_v22 = vpop.permute.xlu1 %174   ;;  %v166_v23 = vpop.permute.xlu0 %165  }
  0x91   :  { %343 = vst.msk [vmem:[%s715_s1 + $0xc4] ss:$8 sm:$0xf] %vm3_vm0, %v175_v22   ;;  %344 = vst.msk [vmem:[%s715_s1 + $0xc4] ss:$8 sm:$0xf0] %vm3_vm0, %v175_v22  }
  0x92   :  { %340 = vst.msk [vmem:[%s715_s1 + $0x84] ss:$8 sm:$0xf] %vm3_vm0, %v166_v23   ;;  %341 = vst.msk [vmem:[%s715_s1 + $0x84] ss:$8 sm:$0xf0] %vm3_vm0, %v166_v23  }
  0x94   :  { %v192_v24 = vpop.permute.xlu1 %191   ;;  %v183_v25 = vpop.permute.xlu0 %182  }
  0x95   :  { %348 = vst.msk [vmem:[%s715_s1 + $0x45] ss:$8 sm:$0xf] %vm3_vm0, %v192_v24   ;;  %349 = vst.msk [vmem:[%s715_s1 + $0x45] ss:$8 sm:$0xf0] %vm3_vm0, %v192_v24  }
  0x96   :  { %345 = vst.msk [vmem:[%s715_s1 + $0x5] ss:$8 sm:$0xf] %vm3_vm0, %v183_v25   ;;  %346 = vst.msk [vmem:[%s715_s1 + $0x5] ss:$8 sm:$0xf0] %vm3_vm0, %v183_v25  }
  0x98   :  { %v210_v26 = vpop.permute.xlu1 %209   ;;  %v201_v27 = vpop.permute.xlu0 %200  }
  0x99   :  { %354 = vst.msk [vmem:[%s715_s1 + $0xc5] ss:$8 sm:$0xf] %vm3_vm0, %v210_v26   ;;  %355 = vst.msk [vmem:[%s715_s1 + $0xc5] ss:$8 sm:$0xf0] %vm3_vm0, %v210_v26  }
  0x9a   :  { %351 = vst.msk [vmem:[%s715_s1 + $0x85] ss:$8 sm:$0xf] %vm3_vm0, %v201_v27   ;;  %352 = vst.msk [vmem:[%s715_s1 + $0x85] ss:$8 sm:$0xf0] %vm3_vm0, %v201_v27  }
  0x9c   :  { %v227_v28 = vpop.permute.xlu1 %226   ;;  %v218_v29 = vpop.permute.xlu0 %217  }
  0x9d   :  { %359 = vst.msk [vmem:[%s715_s1 + $0x46] ss:$8 sm:$0xf] %vm3_vm0, %v227_v28   ;;  %360 = vst.msk [vmem:[%s715_s1 + $0x46] ss:$8 sm:$0xf0] %vm3_vm0, %v227_v28  }
  0x9e   :  { %356 = vst.msk [vmem:[%s715_s1 + $0x6] ss:$8 sm:$0xf] %vm3_vm0, %v218_v29   ;;  %357 = vst.msk [vmem:[%s715_s1 + $0x6] ss:$8 sm:$0xf0] %vm3_vm0, %v218_v29  }
  0xa0   :  { %v245_v30 = vpop.permute.xlu1 %244   ;;  %v236_v31 = vpop.permute.xlu0 %235  }
  0xa1   :  { %365 = vst.msk [vmem:[%s715_s1 + $0xc6] ss:$8 sm:$0xf] %vm3_vm0, %v245_v30   ;;  %366 = vst.msk [vmem:[%s715_s1 + $0xc6] ss:$8 sm:$0xf0] %vm3_vm0, %v245_v30  }
  0xa2   :  { %362 = vst.msk [vmem:[%s715_s1 + $0x86] ss:$8 sm:$0xf] %vm3_vm0, %v236_v31   ;;  %363 = vst.msk [vmem:[%s715_s1 + $0x86] ss:$8 sm:$0xf0] %vm3_vm0, %v236_v31  }
  0xa4   :  { %v262_v32 = vpop.permute.xlu1 %261   ;;  %v253_v33 = vpop.permute.xlu0 %252  }
  0xa5   :  { %370 = vst.msk [vmem:[%s715_s1 + $0x47] ss:$8 sm:$0xf] %vm3_vm0, %v262_v32   ;;  %371 = vst.msk [vmem:[%s715_s1 + $0x47] ss:$8 sm:$0xf0] %vm3_vm0, %v262_v32  }
  0xa6   :  { %367 = vst.msk [vmem:[%s715_s1 + $0x7] ss:$8 sm:$0xf] %vm3_vm0, %v253_v33   ;;  %368 = vst.msk [vmem:[%s715_s1 + $0x7] ss:$8 sm:$0xf0] %vm3_vm0, %v253_v33  }
  0xa8   :  { %v280_v34 = vpop.permute.xlu1 %279   ;;  %v271_v35 = vpop.permute.xlu0 %270  }
  0xa9   :  { %376 = vst.msk [vmem:[%s715_s1 + $0xc7] ss:$8 sm:$0xf] %vm3_vm0, %v280_v34   ;;  %377 = vst.msk [vmem:[%s715_s1 + $0xc7] ss:$8 sm:$0xf0] %vm3_vm0, %v280_v34  }
  0xaa   :  { %373 = vst.msk [vmem:[%s715_s1 + $0x87] ss:$8 sm:$0xf] %vm3_vm0, %v271_v35   ;;  %374 = vst.msk [vmem:[%s715_s1 + $0x87] ss:$8 sm:$0xf0] %vm3_vm0, %v271_v35  }

// kernel: attention_fuse_forward.4
= control target key start
LH: loop header
LB: loop body
LE: loop exit
PB: predicated region body
PF: predicated region fallthrough
CT: control target
= control target key end

     0   :  { %s673_s12 = smov 0   ;;  %s675_s13 = smov 0   ;;  %s759_s0 = inlined_call_operand.vmem [shape: f32[3,2,72,256], index: 0, kind: input, shape index: {}]   ;;  %s760_s1 = inlined_call_operand.vmem [shape: f32[3,8,72], index: 1, kind: input, shape index: {}]   ;;  %s761_s2 = inlined_call_operand.vmem [shape: f32[3,8,256], index: 2, kind: input, shape index: {}]   ;;  %s762_s3 = inlined_call_operand.vmem [shape: f32[3,2,8,256], index: 3, kind: output, shape index: {}]  }
   0x1   :  { %s677_s14 = smov 0   ;;  %s679_s15 = smov 0  }
   0x2   :  { %s681_s16 = smov 0  }
   0x3 LB: > { %s28_s17 = sadd.s32 1, %s642_s14  ;;  %s32_s18 = sadd.s32 1, %s646_s15  ;;  %s650_s16 = sphi %s681_s16, %s13_s16   ;;  %s646_s15 = sphi %s679_s15, %s766_s15   ;;  %s642_s14 = sphi %s677_s14, %s765_s14   ;;  %s638_s13 = sphi %s675_s13, %s764_s13   ;;  %s634_s12 = sphi %s673_s12, %s763_s12  }
   0x4   : > { %p30_p0 = scmp.ge.s32.totalorder %s28_s17, 2  ;;  %p541_p1 = scmp.ge.s32.totalorder %s650_s16, 1 }
   0x5   : > { %p199_p2 = scmp.lt.s32.totalorder %s650_s16, 7 }
   0x6   : > { %s768_s17 = smov (%p30_p0, %s28_s17), 0  ;;  %s770_s18 = smov (!%p30_p0, %s32_s18), %s646_s15 }
   0x7   : > { %p200_p3 = pnand %p541_p1, %p199_p2  ;;  %p34_p4 = scmp.ge.s32.totalorder %s770_s18, 3 }
   0x8   : > { %p253_p5 = scmp.lt.s32.totalorder (!%p200_p3), %s638_s13, 2  ;;  %p255_p6 = scmp.lt.s32.totalorder (!%p200_p3), %s634_s12, 1  ;;  %v652_v0 = vmov (!%p200_p3), 0.0   ;;  %vm315_vm0 = vcmask (!%p200_p3), 588800  }
   0x9   : > { %s772_s18 = smov (%p34_p4, %s770_s18), 0  ;;  %203 = sbr.rel (%p200_p3) target bundleno = 260 (0x104), region = 32 }
   0xa   : > { %383 = vmatprep.mubr.f32.mxu0 (!%p200_p3), %v652_v0 }
  0x10   : > { %s774_s13 = smov (!%p253_p5, %s638_s13), 2  ;;  %s776_s12 = smov (!%p255_p6, %s634_s12), 1 }
  0x11   : > { %s570_s19 = smul.u32 36, %s774_s13  ;;  %s546_s21 = sshll.u32 %s776_s12, 1 }
  0x12   : > { %s569_s20 = smul.u32 18, %s776_s12  ;;  %s547_s24 = sshll.u32 %s774_s13, 2 }
  0x13   : > { %s712_s28 = sadd.s32 %s547_s24, %s546_s21  ;;  %s543_s29 = sshll.u32 %s774_s13, 3 }
  0x14   : > { %s262_s22 = sadd.s32 %s570_s19, %s569_s20  ;;  %s269_s5 = scalar_lea.vmem %s760_s1, %s543_s29 }
  0x15   : > { %s542_s23 = sshll.u32 %s262_s22, 3  ;;  %v294_v27 = vld [vmem:[%s269_s5] sm:$0xff]  ;;  %s552_s6 = sshll.u32 %s774_s13, 4 }
  0x16   : > { %s710_s27 = scalar_lea.vmem %s759_s0, %s542_s23  ;;  %s278_s9 = scalar_lea.vmem %s761_s2, %s552_s6 }
  0x17   : > { %v296_v1 = vld [vmem:[%s710_s27 + $0x8] sm:$0xff]  ;;  %v298_v2 = vld [vmem:[%s710_s27 + $0x18] sm:$0xff]  ;;  %v295_v3 = vld [vmem:[%s710_s27] sm:$0xff]  ;;  %s548_s10 = sshll.u32 %s712_s28, 3 }
  0x18   : > { %v553_v4 = vpack.c.bf16 %v298_v2, %v296_v1  ;;  %v297_v5 = vld [vmem:[%s710_s27 + $0x10] sm:$0xff]  ;;  %v300_v6 = vld [vmem:[%s710_s27 + $0x28] sm:$0xff]  ;;  %v302_v7 = vld [vmem:[%s710_s27 + $0x38] sm:$0xff]  ;;  %s292_s19 = scalar_lea.vmem %s762_s3, %s548_s10 }
  0x19   : > { %v555_v8 = vpack.c.bf16 %v297_v5, %v295_v3  ;;  %v557_v9 = vpack.c.bf16 %v302_v7, %v300_v6  ;;  %v299_v10 = vld [vmem:[%s710_s27 + $0x20] sm:$0xff]  ;;  %v301_v11 = vld [vmem:[%s710_s27 + $0x30] sm:$0xff]  ;;  %v304_v12 = vld [vmem:[%s710_s27 + $0x48] sm:$0xff] }
  0x1a   : > { %554 = vmatprep.subr.bf16.mxu0 %v553_v4  ;;  %v306_v13 = vld [vmem:[%s710_s27 + $0x58] sm:$0xff]  ;;  %v559_v14 = vpack.c.bf16 %v301_v11, %v299_v10  ;;  %v303_v16 = vld [vmem:[%s710_s27 + $0x40] sm:$0xff]  ;;  %v305_v17 = vld [vmem:[%s710_s27 + $0x50] sm:$0xff] }
  0x1b   : > { %556 = vmatpush1.bf16.msra.mxu0 %v555_v8  ;;  %v561_v15 = vpack.c.bf16 %v306_v13, %v304_v12  ;;  %v308_v18 = vld [vmem:[%s710_s27 + $0x68] sm:$0xff]  ;;  %v310_v19 = vld [vmem:[%s710_s27 + $0x78] sm:$0xff]  ;;  %v563_v20 = vpack.c.bf16 %v305_v17, %v303_v16  ;;  %v307_v22 = vld [vmem:[%s710_s27 + $0x60] sm:$0xff] }
  0x1c   : > { %558 = vmatprep.subr.bf16.mxu0 %v557_v9  ;;  %v565_v21 = vpack.c.bf16 %v310_v19, %v308_v18  ;;  %v309_v23 = vld [vmem:[%s710_s27 + $0x70] sm:$0xff]  ;;  %v312_v25 = vld [vmem:[%s710_s27 + $0x88] sm:$0xff]  ;;  %v311_v26 = vld [vmem:[%s710_s27 + $0x80] sm:$0xff] }
  0x1d   : > { %v567_v24 = vpack.c.bf16 %v309_v23, %v307_v22  ;;  %v313_v28 = vld [vmem:[%s278_s9] sm:$0xff]  ;;  %v314_v29 = vld [vmem:[%s278_s9 + $0x8] sm:$0xff] }
  0x1f   : > { %560 = vmatpush1.bf16.msra.mxu0 %v559_v14 }
  0x20   : > { %562 = vmatprep.subr.bf16.mxu0 %v561_v15 }
  0x23   : > { %564 = vmatpush1.bf16.msra.mxu0 %v563_v20 }
  0x24   : > { %566 = vmatprep.subr.bf16.mxu0 %v565_v21 }
  0x27   : > { %568 = vmatpush1.bf16.msra.mxu0 %v567_v24 }
  0x28   : > { %335 = vmatprep.subr.mxu0 %v312_v25 }
  0x2b   : > { %336 = vmatpush1.msra.mxu0 %v311_v26 }
  0x2c   : > { %549 = vmatmul.mubr.msk.f32.vlgmr.msra.gmra.mrb[0].mxu0 %vm315_vm0, %v294_v27 }
  0xff   : > { %v385_v30 = vpop.f32.mrb[0].mxu0 }
 0x100   : > { %v386_v31 = vadd.f32 %v385_v30, %v313_v28  ;;  %v387_v32 = vpop.f32.mrb[1].mxu0 }
 0x101   : > { %v388_v33 = vadd.f32 %v387_v32, %v314_v29 }
 0x102   : > { %390 = vst [vmem:[%s292_s19] sm:$0xff] %v386_v31 }
 0x103   : > { %391 = vst [vmem:[%s292_s19 + $0x8] sm:$0xff] %v388_v33 }
 0x104 PF: > { %s13_s16 = sadd.s32 1, %s650_s16   ;;  %s763_s12 = smov %s642_s14 }
 0x105   : > { %p10_p7 = scmp.ge.s32.totalorder %s13_s16, 8   ;;  %s764_s13 = smov %s646_s15 }
 0x106   : > { %s765_s14 = smov %s768_s17  ;;  %s766_s15 = smov %s772_s18 }
 0x107   :  { %12 = sbr.rel (!%p10_p7) target bundleno = 3 (0x3), region = 68 }

// kernel: squeeze.18
= control target key start
LH: loop header
LB: loop body
LE: loop exit
PB: predicated region body
PF: predicated region fallthrough
CT: control target
= control target key end

     0   :  { %s133_s0 = inlined_call_operand.vmem [shape: f32[1,2,8,256], index: 0, kind: input, shape index: {}]   ;;  %s134_s1 = inlined_call_operand.vmem [shape: f32[2,2,4,256], index: 1, kind: output, shape index: {}]  }
   0x1   :  { %v2_v0 = vld [vmem:[%s133_s0] sm:$0xff]   ;;  %v77_v1 = vld [vmem:[%s133_s0 + $0x8] sm:$0xff]   ;;  %v78_v2 = vld [vmem:[%s133_s0 + $0x10] sm:$0xff]  }
   0x2   :  { %3 = vst [vmem:[#allocation0] sm:$0xf] %v2_v0   ;;  %5 = vst [vmem:[#allocation0 + $0xc] sm:$0xf0] %v2_v0   ;;  %v79_v3 = vld [vmem:[%s133_s0 + $0x18] sm:$0xff]  }
   0x3   :  { %9 = vst [vmem:[#allocation0 + $0x8] sm:$0xf] %v77_v1   ;;  %11 = vst [vmem:[#allocation0 + $0x14] sm:$0xf0] %v77_v1  }
   0x4   :  { %15 = vst [vmem:[#allocation0 + $0x20] sm:$0xf] %v78_v2   ;;  %17 = vst [vmem:[#allocation0 + $0x2c] sm:$0xf0] %v78_v2  }
   0x5   :  { %21 = vst [vmem:[#allocation0 + $0x28] sm:$0xf] %v79_v3   ;;  %23 = vst [vmem:[#allocation0 + $0x34] sm:$0xf0] %v79_v3  }
   0x9   :  { %v27_v4 = vld [vmem:[#allocation0] sm:$0xf]  ;;  %v36_v6 = vld [vmem:[#allocation0 + $0x10] sm:$0xf] }
   0xa   :  { %v31_v5 = vld [vmem:[#allocation0 + $0x8] sm:$0xf]  ;;  %29 = vst [vmem:[%s134_s1] sm:$0xf] %v27_v4  ;;  %81 = vst [vmem:[%s134_s1 + $0x8] sm:$0xf] %v36_v6 }
   0xb   :  { %80 = vst [vmem:[%s134_s1 + $0x4] sm:$0xf] %v31_v5  ;;  %v42_v7 = vld [vmem:[#allocation0 + $0x18] sm:$0xf]  ;;  %v48_v8 = vld [vmem:[#allocation0 + $0x20] sm:$0xf] }
   0xc   :  { %v54_v9 = vld [vmem:[#allocation0 + $0x28] sm:$0xf]  ;;  %82 = vst [vmem:[%s134_s1 + $0xc] sm:$0xf] %v42_v7  ;;  %83 = vst [vmem:[%s134_s1 + $0x10] sm:$0xf] %v48_v8 }
   0xd   :  { %84 = vst [vmem:[%s134_s1 + $0x14] sm:$0xf] %v54_v9  ;;  %v60_v10 = vld [vmem:[#allocation0 + $0x30] sm:$0xf]  ;;  %v66_v11 = vld [vmem:[#allocation0 + $0x38] sm:$0xf] }
   0xe   :  { %85 = vst [vmem:[%s134_s1 + $0x18] sm:$0xf] %v60_v10  ;;  %86 = vst [vmem:[%s134_s1 + $0x1c] sm:$0xf] %v66_v11 }

// kernel: attention_fuse_forward.5
= control target key start
LH: loop header
LB: loop body
LE: loop exit
PB: predicated region body
PF: predicated region fallthrough
CT: control target
= control target key end

     0   :  { %s756_s12 = smov 0   ;;  %s758_s13 = smov 0   ;;  %s853_s0 = inlined_call_operand.vmem [shape: f32[1,2,72,256], index: 0, kind: input, shape index: {}]   ;;  %s854_s1 = inlined_call_operand.vmem [shape: f32[1,8,72], index: 1, kind: input, shape index: {}]   ;;  %s855_s2 = inlined_call_operand.vmem [shape: f32[1,8,256], index: 2, kind: input, shape index: {}]   ;;  %s856_s3 = inlined_call_operand.vmem [shape: f32[1,2,8,256], index: 3, kind: output, shape index: {}]  }
   0x1   :  { %s760_s14 = smov 0   ;;  %s762_s15 = smov 0  }
   0x2   :  { %s764_s16 = smov 0   ;;  %s766_s17 = smov 0  }
   0x3   :  { %s768_s18 = smov 0  }
   0x4 LB: > { %s25_s19 = sadd.s32 1, %s723_s16  ;;  %s28_s20 = sadd.s32 1, %s727_s17  ;;  %s731_s18 = sphi %s768_s18, %s13_s18   ;;  %s727_s17 = sphi %s766_s17, %s862_s17   ;;  %s723_s16 = sphi %s764_s16, %s861_s16   ;;  %s719_s15 = sphi %s762_s15, %s860_s15   ;;  %s715_s14 = sphi %s760_s14, %s859_s14   ;;  %s711_s13 = sphi %s758_s13, %s858_s13   ;;  %s707_s12 = sphi %s756_s12, %s857_s12  }
   0x5   : > { %p26_p0 = scmp.ge.s32.totalorder %s25_s19, 2  ;;  %p50_p1 = scmp.ne.s32.totalorder %s711_s13, %s707_s12 }
   0x6   : > { %p51_p2 = scmp.eq.s32.totalorder %s731_s18, 0  ;;  %s43_s24 = sadd.s32 1, %s711_s13 }
   0x7   : > { %s864_s19 = smov (%p26_p0, %s25_s19), 0  ;;  %s866_s20 = smov (!%p26_p0, %s28_s20), %s727_s17 }
   0x8   : > { %p52_p3 = por %p51_p2, %p50_p1  ;;  %p30_p4 = scmp.ge.s32.totalorder %s866_s20, 2 }
   0x9   : > { %s39_s21 = ssub.s32 %s723_s16, %s864_s19  ;;  %p563_p6 = scmp.ge.s32.totalorder %s731_s18, 4 }
   0xa   : > { %s868_s20 = smov (%p30_p4, %s866_s20), 0 }
   0xb   : > { %s37_s22 = ssub.s32 %s727_s17, %s868_s20  ;;  %167 = sbr.rel (%p563_p6) target bundleno = 30 (0x1e), region = 20 }
   0xc   : > { %s40_s23 = sor.u32 %s39_s21, %s37_s22 }
   0xd   : > { %p41_p5 = scmp.eq.s32.totalorder %s40_s23, 0 }
   0xf   : > { %s807_s25 = scalar_select %p41_p5, %s711_s13, %s43_s24  }
  0x12   : > { %170 = sbr.rel (!%p52_p3) target bundleno = 30 (0x1e), region = 24  ;;  %s172_s26 = sand.u32 (%p52_p3), 1, %s711_s13  }
  0x13   : > { %s616_s27 = smul.u32 (%p52_p3), 18, %s727_s17 }
  0x14   : > { %s615_s28 = smul.u32 (%p52_p3), 72, %s172_s26 }
  0x15   : > { %s176_s29 = sadd.s32 (%p52_p3), %s723_s16, %s616_s27 }
  0x16   : > { %s564_s30 = sshll.u32 (%p52_p3), %s176_s29, 3  ;;  %s174_s7 = scalar_lea.vmem (%p52_p3), [#allocation2], %s615_s28 }
  0x17   : > { %s180_s6 = scalar_lea.vmem (%p52_p3), %s853_s0, %s564_s30 }
  0x18   : > { %v224_v0 = vld [vmem:[%s180_s6] sm:$0xff] (%p52_p3)  ;;  %v226_v1 = vld [vmem:[%s180_s6 + $0x10] sm:$0xff] (%p52_p3) }
  0x19   : > { %v228_v2 = vld [vmem:[%s180_s6 + $0x20] sm:$0xff]  ;;  %225 = vst [vmem:[%s174_s7] sm:$0xff] %v224_v0  ;;  %227 = vst [vmem:[%s174_s7 + $0x8] sm:$0xff] %v226_v1  ;;  %v230_v3 = vld [vmem:[%s180_s6 + $0x30] sm:$0xff] }
  0x1a   : > { %229 = vst [vmem:[%s174_s7 + $0x10] sm:$0xff] %v228_v2  ;;  %v232_v4 = vld [vmem:[%s180_s6 + $0x40] sm:$0xff]  ;;  %v234_v5 = vld [vmem:[%s180_s6 + $0x50] sm:$0xff]  ;;  %231 = vst [vmem:[%s174_s7 + $0x18] sm:$0xff] %v230_v3 }
  0x1b   : > { %233 = vst [vmem:[%s174_s7 + $0x20] sm:$0xff] %v232_v4  ;;  %235 = vst [vmem:[%s174_s7 + $0x28] sm:$0xff] %v234_v5  ;;  %v236_v6 = vld [vmem:[%s180_s6 + $0x60] sm:$0xff]  ;;  %v238_v7 = vld [vmem:[%s180_s6 + $0x70] sm:$0xff] }
  0x1c   : > { %v240_v8 = vld [vmem:[%s180_s6 + $0x80] sm:$0xff]  ;;  %237 = vst [vmem:[%s174_s7 + $0x30] sm:$0xff] %v236_v6  ;;  %239 = vst [vmem:[%s174_s7 + $0x38] sm:$0xff] %v238_v7 }
  0x1d   : > { %241 = vst [vmem:[%s174_s7 + $0x40] sm:$0xff] %v240_v8 }
  0x1e PF: > { %p565_p7 = scmp.ge.s32.totalorder %s731_s18, 1  ;;  %p257_p8 = scmp.lt.s32.totalorder %s731_s18, 5 }
  0x20   : > { %p258_p9 = pnand %p565_p7, %p257_p8 }
  0x21   : > { %s264_s8 = sand.u32 (!%p258_p9), 1, %s707_s12   ;;  %v733_v9 = vmov (!%p258_p9), 0.0|0.0   ;;  %vm734_vm0 = vmmov (!%p258_p9), 0   ;;  %v735_v10 = vmov (!%p258_p9), 0.0   ;;  %v330_v24 = vld [vmem:[%s854_s1] sm:$0xff] (!%p258_p9)  ;;  %vm341_vm1 = vcmask (!%p258_p9), 588800  }
  0x22   : > { %261 = sbr.rel (%p258_p9) target bundleno = 273 (0x111), region = 66  ;;  %603 = vmatprep.subr.bf16.mxu0 (!%p258_p9), %v733_v9  ;;  %600 = vmatprep.mubr.msk.f32.mxu0 (!%p258_p9), %vm734_vm0, %v735_v10  ;;  %p320_p10 = scmp.lt.s32.totalorder (!%p258_p9), %s719_s15, 1 }
  0x23   : > { %s617_s9 = smul.u32 (!%p258_p9), 72, %s264_s8  ;;  %p312_p11 = scmp.lt.s32.totalorder (!%p258_p9), %s715_s14, 1 }
  0x25   : > { %s266_s10 = scalar_lea.vmem (!%p258_p9), [#allocation2], %s617_s9 }
  0x26   : > { %v331_v11 = vld [vmem:[%s266_s10] sm:$0xff] (!%p258_p9)  ;;  %v332_v12 = vld [vmem:[%s266_s10 + $0x8] sm:$0xff] (!%p258_p9)  ;;  %v333_v13 = vld [vmem:[%s266_s10 + $0x10] sm:$0xff] (!%p258_p9) }
  0x27   : > { %v604_v14 = vpack.c.bf16 (!%p258_p9), %v332_v12, %v331_v11  ;;  %v334_v15 = vld [vmem:[%s266_s10 + $0x18] sm:$0xff] (!%p258_p9)  ;;  %v335_v17 = vld [vmem:[%s266_s10 + $0x20] sm:$0xff] (!%p258_p9)  ;;  %v336_v18 = vld [vmem:[%s266_s10 + $0x28] sm:$0xff] (!%p258_p9) }
  0x28   : > { %v607_v16 = vpack.c.bf16 (!%p258_p9), %v334_v15, %v333_v13  ;;  %v610_v19 = vpack.c.bf16 (!%p258_p9), %v336_v18, %v335_v17  ;;  %v337_v20 = vld [vmem:[%s266_s10 + $0x30] sm:$0xff] (!%p258_p9)  ;;  %v338_v21 = vld [vmem:[%s266_s10 + $0x38] sm:$0xff] (!%p258_p9)  ;;  %v339_v23 = vld [vmem:[%s266_s10 + $0x40] sm:$0xff] (!%p258_p9) }
  0x29   : > { %605 = vmatpush3.bf16.msra.mxu0 %v604_v14  ;;  %v613_v22 = vpack.c.bf16 %v338_v21, %v337_v20  ;;  %s870_s15 = smov (!%p320_p10, %s719_s15), 1  ;;  %s872_s14 = smov (!%p312_p11, %s715_s14), 1 }
  0x2a   : > { %606 = vmatprep.subr.bf16.mxu0 %v733_v9  ;;  %s567_s21 = sshll.u32 %s870_s15, 1  ;;  %s566_s22 = sshll.u32 %s872_s14, 3 }
  0x2b   : > { %s325_s23 = sadd.s32 %s567_s21, %s872_s14  ;;  %s317_s27 = scalar_lea.vmem %s855_s2, %s566_s22 }
  0x2c   : > { %s568_s28 = sshll.u32 %s325_s23, 3  ;;  %v340_v25 = vld [vmem:[%s317_s27] sm:$0xff] }
  0x2d   : > { %608 = vmatpush3.bf16.msra.mxu0 %v607_v16  ;;  %s329_s4 = scalar_lea.vmem %s856_s3, %s568_s28 }
  0x2e   : > { %609 = vmatprep.subr.bf16.mxu0 %v733_v9 }
  0x31   : > { %611 = vmatpush3.bf16.msra.mxu0 %v610_v19 }
  0x32   : > { %612 = vmatprep.subr.bf16.mxu0 %v733_v9 }
  0x35   : > { %614 = vmatpush3.bf16.msra.mxu0 %v613_v22 }
  0x36   : > { %598 = vmatprep.subr.mxu0 %v735_v10 }
  0x39   : > { %599 = vmatpush3.msra.mxu0 %v339_v23 }
  0x3a   : > { %601 = vmatmul.mubr.msk.f32.vlgmr.msra.gmra.mrb[0].mxu0 %vm341_vm1, %v330_v24 }
 0x10d   : > { %v411_v26 = vpop.f32.mrb[0].mxu0 }
 0x10e   : > { %v412_v27 = vadd.f32 %v411_v26, %v340_v25  ;;  %v602_v28 = vpop.f32.mrb[1].mxu0 }
 0x110   : > { %415 = vst [vmem:[%s329_s4] sm:$0xff] %v412_v27 }
 0x111 PF: > { %s13_s18 = sadd.s32 1, %s731_s18   ;;  %s857_s12 = smov %s711_s13 }
 0x112   : > { %p10_p12 = scmp.ge.s32.totalorder %s13_s18, 6   ;;  %s858_s13 = smov %s807_s25 }
 0x113   : > { %s859_s14 = smov %s723_s16  ;;  %s860_s15 = smov %s727_s17 }
 0x114   : > { %s861_s16 = smov %s864_s19  ;;  %s862_s17 = smov %s868_s20 }
 0x115   :  { %12 = sbr.rel (!%p10_p12) target bundleno = 4 (0x4), region = 111 }

// kernel: attention_fuse_forward.6
= control target key start
LH: loop header
LB: loop body
LE: loop exit
PB: predicated region body
PF: predicated region fallthrough
CT: control target
= control target key end

     0   :  { %s1104_s18 = smov 0   ;;  %s1106_s19 = smov 0   ;;  %s1189_s0 = inlined_call_operand.vmem [shape: f32[2,1,1], index: 0, kind: input, shape index: {}]   ;;  %s1190_s1 = inlined_call_operand.vmem [shape: f32[2,2,4,256], index: 1, kind: input, shape index: {}]   ;;  %s1191_s2 = inlined_call_operand.vmem [shape: f32[2,2,4,256], index: 2, kind: input, shape index: {}]   ;;  %s1192_s3 = inlined_call_operand.vmem [shape: f32[2,2,4,256], index: 3, kind: input, shape index: {}]   ;;  %s1193_s4 = inlined_call_operand.vmem [shape: f32[2,2,4,256], index: 4, kind: input, shape index: {}]   ;;  %s1194_s5 = inlined_call_operand.vmem [shape: f32[2,2,8,256], index: 5, kind: output, shape index: {}]  }
   0x1   :  { %s1108_s20 = smov 0   ;;  %s1110_s21 = smov 0  }
   0x2   :  { %s1112_s22 = smov 0  }
   0x3 LB: > { %s24_s23 = sadd.s32 1, %s1061_s20  ;;  %s27_s24 = sadd.s32 1, %s1065_s21  ;;  %s1069_s22 = sphi %s1112_s22, %s15_s22   ;;  %s1065_s21 = sphi %s1110_s21, %s1198_s21   ;;  %s1061_s20 = sphi %s1108_s20, %s1197_s20   ;;  %s1057_s19 = sphi %s1106_s19, %s1196_s19   ;;  %s1053_s18 = sphi %s1104_s18, %s1195_s18  }
   0x4   : > { %p25_p0 = scmp.ge.s32.totalorder %s24_s23, 2  ;;  %p947_p1 = scmp.ge.s32.totalorder %s1069_s22, 1 }
   0x5   : > { %p263_p2 = scmp.lt.s32.totalorder %s1069_s22, 5 }
   0x6   : > { %s1200_s23 = smov (%p25_p0, %s24_s23), 0  ;;  %s1202_s24 = smov (!%p25_p0, %s27_s24), %s1065_s21 }
   0x7   : > { %p264_p3 = pnand %p947_p1, %p263_p2  ;;  %p29_p4 = scmp.ge.s32.totalorder %s1202_s24, 2 }
   0x8   : > { %p329_p5 = scmp.lt.s32.totalorder (!%p264_p3), %s1053_s18, 1  ;;  %p332_p6 = scmp.lt.s32.totalorder (!%p264_p3), %s1057_s19, 1  ;;  %vm384_vm0 = vcmask (!%p264_p3), 1043456   ;;  %v1071_v12 = vmov (!%p264_p3), 0   ;;  %v1072_v16 = vmov (!%p264_p3), 839922192   ;;  %v396_v18 = vlaneseq (!%p264_p3) }
   0x9   : > { %s1204_s24 = smov (%p29_p4, %s1202_s24), 0  ;;  %267 = sbr.rel (%p264_p3) target bundleno = 941 (0x3ad), region = 40 }
   0xa   : > { %1015 = vset.pattern.permute.xlu1 (!%p264_p3), %v1071_v12  ;;  %1016 = vset.pattern.permute.xlu0 (!%p264_p3), %v1071_v12  ;;  %v394_v17 = vunpack.c.l.s4 (!%p264_p3), %v1072_v16  ;;  %v397_v22 = vshrl.u32 (!%p264_p3), %v396_v18, 7  ;;  %vm580_vm1 = vcmask (!%p264_p3), 27648   ;;  %v1073_v54 = vmov (!%p264_p3), 0.0  }
   0xb   : > { %vm606_vm2 = vcmask (!%p264_p3), 31744  }
   0xc   : > { %v395_v21 = vunpack.c.0.s8 (!%p264_p3), %v394_v17 }
   0xe   : > { %v398_v23 = vsub.s32 (!%p264_p3), %v395_v21, %v397_v22 }
  0x10   : > { %s1206_s18 = smov (!%p329_p5, %s1053_s18), 1  ;;  %s1208_s19 = smov (!%p332_p6, %s1057_s19), 1 }
  0x11   : > { %s948_s25 = sshll.u32 %s1206_s18, 1  ;;  %s949_s26 = sshll.u32 %s1208_s19, 2 }
  0x12   : > { %s1134_s27 = sadd.s32 %s949_s26, %s948_s25  ;;  %s331_s12 = scalar_lea.vmem %s1189_s0, %s1206_s18 }
  0x13   : > { %s1137_s28 = sshll.u32 %s1134_s27, 2  ;;  %v963_v13 = vld [vmem:[%s331_s12] ss:$0 sm:$0xff]  ;;  %s962_s19 = sshll.u32 %s1134_s27, 3 }
  0x14   : > { %s340_s6 = scalar_lea.vmem %s1190_s1, %s1137_s28  ;;  %s349_s9 = scalar_lea.vmem %s1191_s2, %s1137_s28  ;;  %505 = vperm.xlu1 %1015, %v963_v13  }
  0x15   : > { %v378_v0 = vld [vmem:[%s340_s6] sm:$0xff]  ;;  %s367_s15 = scalar_lea.vmem %s1193_s4, %s1137_s28  ;;  %s358_s18 = scalar_lea.vmem %s1192_s3, %s1137_s28 }
  0x16   : > { %v379_v1 = vld [vmem:[%s349_s9] sm:$0xff]  ;;  %v380_v2 = vmul.f32 %v378_v0, %v378_v0  ;;  %s376_s28 = scalar_lea.vmem %s1194_s5, %s962_s19 }
  0x17   : > { %v402_v3 = vmul.f32 %v379_v1, %v379_v1  ;;  %v685_v51 = vld [vmem:[%s367_s15] sm:$0xff] }
  0x18   : > { %v382_v4 = vcombine.high %v380_v2, %v380_v2  ;;  %v385_v5 = vsel %vm384_vm0, %v380_v2, 0.0  ;;  %v687_v52 = vcombine.high %v685_v51, %v685_v51  ;;  %v603_v53 = vld [vmem:[%s358_s18] sm:$0xff] }
  0x19   : > { %v404_v6 = vcombine.high %v402_v3, %v402_v3  ;;  %v406_v8 = vsel %vm384_vm0, %v402_v3, 0.0  ;;  %v605_v55 = vcombine.high %v603_v53, %v603_v53 }
  0x1a   : > { %v386_v7 = vsel %vm384_vm0, %v382_v4, 0.0 }
  0x1b   : > { %v407_v9 = vsel %vm384_vm0, %v404_v6, 0.0  ;;  %v387_v10 = vadd.f32 %v386_v7, %v385_v5 }
  0x1c   : > { %v408_v11 = vadd.f32 %v407_v9, %v406_v8 }
  0x1d   : > { %388 = vadd.xlane.f32.xlu0 %v387_v10 }
  0x21   : > { %409 = vadd.xlane.f32.xlu0 %v408_v11 }
  0x93   : > { %v506_v32 = vpop.permute.xlu1 %505 }
  0xaa   : > { %v389_v14 = vpop.xlane.xlu0 %388 }
  0xab   : > { %v390_v15 = vmax.f32 %v389_v14, 1e-24 }
  0xad   : > { %1019 = vrsqrt.f32 %v390_v15 }
  0xae   : > { %v410_v19 = vpop.xlane.xlu0 %409 }
  0xaf   : > { %v411_v20 = vmax.f32 %v410_v19, 1e-24 }
  0xb1   : > { %1021 = vrsqrt.f32 %v411_v20 }
  0xb7   : > { %v1020_v24 = vpop.eup %1019 }
  0xb8   : > { %v399_v25 = vrot.slane %v1020_v24, %v398_v23 }
  0xba   : > { %v401_v26 = vmul.f32 %v399_v25, %v378_v0 }
  0xbb   : > { %v1022_v27 = vpop.eup %1021 }
  0xbc   : > { %v424_v28 = vcombine.high %v401_v26, %v401_v26  ;;  %v420_v29 = vrot.slane %v1022_v27, %v398_v23 }
  0xbe   : > { %493 = vmatprep.mubr.f32.mxu0 %v424_v28  ;;  %509 = vmatprep.subr.mxu1 %v424_v28  ;;  %v422_v30 = vmul.f32 %v420_v29, %v379_v1 }
  0xbf   : > { %510 = vmatpush1.xpose.msra.mxu1 %v401_v26 }
  0xc0   : > { %v427_v31 = vcombine.high %v422_v30, %v422_v30  ;;  %967 = vmatprep.subr.msk.mxu1 %vm384_vm0, %v687_v52 }
  0xc2   : > { %429 = vmatprep.subr.mxu0 %v427_v31  ;;  %573 = vmatprep.mubr.f32.mxu1 %v427_v31 }
  0xc3   : > { %430 = vmatpush1.xpose.msra.mxu0 %v422_v30  ;;  %574 = vmatmul.mubr.f32.vlgmr.msra.gmra.mrb[0].mxu1 %v422_v30 }
  0xc4   : > { %968 = vmatpush1.msk.msra.mxu1 %vm384_vm0, %v685_v51  ;;  %759 = vmatprep.mubr.f32.mxu1 %v1073_v54 }
  0xc5   : > { %964 = vmatprep.subr.msk.mxu0 %vm384_vm0, %v605_v55 }
  0xc6   : > { %494 = vmatmul.mubr.f32.vlgmr.msra.gmra.mrb[0].mxu0 %v401_v26 }
  0xc7   : > { %678 = vmatprep.mubr.f32.mxu0 %v1073_v54  ;;  %965 = vmatpush1.msk.msra.mxu0 %vm384_vm0, %v603_v53 }
 0x196   : > { %v575_v33 = vpop.f32.mrb[0].mxu1 }
 0x197   : > { %v579_v34 = vmul.f32 %v575_v33, %v506_v32  ;;  %v577_v35 = vpop.f32.mrb[1].mxu1 }
 0x199   : > { %v495_v36 = vpop.f32.mrb[0].mxu0  ;;  %v592_v37 = vsel %vm580_vm1, %v579_v34, -inf }
 0x19a   : > { %v508_v38 = vmul.f32 %v506_v32, %v495_v36  ;;  %v497_v39 = vpop.f32.mrb[1].mxu0  ;;  %593 = vmax.xlane.f32.xlu1 %v592_v37 }
 0x19c   : > { %v581_v40 = vsel %vm580_vm1, %v508_v38, -inf }
 0x19d   : > { %582 = vmax.xlane.f32.xlu0 %v581_v40 }
 0x227   : > { %v594_v41 = vpop.xlane.xlu1 %593 }
 0x228   : > { %v595_v42 = vsub.f32 %v579_v34, %v594_v41 }
 0x22a   : > { %v596_v43 = vmul.f32 1.442695, %v595_v42  ;;  %v583_v44 = vpop.xlane.xlu0 %582 }
 0x22b   : > { %v584_v45 = vsub.f32 %v508_v38, %v583_v44 }
 0x22c   : > { %1023 = vpow2.f32 %v596_v43 }
 0x22d   : > { %v585_v46 = vmul.f32 1.442695, %v584_v45 }
 0x22f   : > { %1025 = vpow2.f32 %v585_v46 }
 0x236   : > { %v1024_v47 = vpop.eup %1023 }
 0x237   : > { %v598_v48 = vsel %vm580_vm1, %v1024_v47, 0.0 }
 0x238   : > { %599 = vadd.xlane.f32.xlu0 %v598_v48 }
 0x239   : > { %v1026_v49 = vpop.eup %1025 }
 0x23a   : > { %v587_v50 = vsel %vm580_vm1, %v1026_v49, 0.0 }
 0x23c   : > { %588 = vadd.xlane.f32.xlu0 %v587_v50 }
 0x2c5   : > { %v600_v56 = vpop.xlane.xlu0 %599 }
 0x2c6   : > { %1027 = vrcp.f32 %v600_v56 }
 0x2c9   : > { %v589_v57 = vpop.xlane.xlu0 %588 }
 0x2ca   : > { %1029 = vrcp.f32 %v589_v57 }
 0x2d0   : > { %v1028_v58 = vpop.eup %1027 }
 0x2d1   : > { %v602_v59 = vmul.f32 %v1028_v58, %v1024_v47 }
 0x2d3   : > { %969 = vmatmul.mubr.msk.f32.vlgmr.msra.gmra.mrb[2].mxu1 %vm606_vm2, %v602_v59 }
 0x2d4   : > { %v1030_v60 = vpop.eup %1029 }
 0x2d5   : > { %v591_v61 = vmul.f32 %v1030_v60, %v1026_v49 }
 0x2d7   : > { %966 = vmatmul.mubr.msk.f32.vlgmr.msra.gmra.mrb[2].mxu0 %vm606_vm2, %v591_v61 }
 0x3a6   : > { %v761_v62 = vpop.f32.mrb[2].mxu1 }
 0x3a7   : > { %v770_v63 = vrot.slane %v761_v62, 4  ;;  %v763_v0 = vpop.f32.mrb[3].mxu1 }
 0x3a8   : > { %v771_v1 = vrot.slane %v763_v0, 4 }
 0x3a9   : > { %774 = vst [vmem:[%s376_s28] sm:$0xf0] %v770_v63 }
 0x3aa   : > { %775 = vst [vmem:[%s376_s28 + $0x8] sm:$0xf0] %v771_v1  ;;  %v680_v2 = vpop.f32.mrb[2].mxu0 }
 0x3ab   : > { %766 = vst [vmem:[%s376_s28] sm:$0xf] %v680_v2  ;;  %v682_v3 = vpop.f32.mrb[3].mxu0 }
 0x3ac   : > { %767 = vst [vmem:[%s376_s28 + $0x8] sm:$0xf] %v682_v3 }
 0x3ad PF: > { %s15_s22 = sadd.s32 1, %s1069_s22   ;;  %s1195_s18 = smov %s1061_s20 }
 0x3ae   : > { %p12_p7 = scmp.ge.s32.totalorder %s15_s22, 6   ;;  %s1196_s19 = smov %s1065_s21 }
 0x3af   : > { %s1197_s20 = smov %s1200_s23  ;;  %s1198_s21 = smov %s1204_s24 }
 0x3b0   :  { %14 = sbr.rel (!%p12_p7) target bundleno = 3 (0x3), region = 82 }

// kernel: squeeze.19
= control target key start
LH: loop header
LB: loop body
LE: loop exit
PB: predicated region body
PF: predicated region fallthrough
CT: control target
= control target key end

     0   :  { %s353_s8 = smov 112   ;;  %s479_s0 = inlined_call_operand.vmem [shape: f32[1,2,8,256], index: 0, kind: input, shape index: {}]   ;;  %s480_s1 = inlined_call_operand.hbm [shape: f32[2,8,16,16], index: 1, kind: output, shape index: {}]  }
   0x1   :  { %v301_v0 = vld.sshfl [vmem:[%s479_s0 + $0x10] sm:$0xff pattern:$0xb3a29180]   ;;  %v42_v1 = vld.sshfl [vmem:[%s479_s0] sm:$0xff pattern:$0xb3a29180]  }
   0x2   :  { %61 = vrot.lane.b32.xlu1 %v301_v0, %s353_s8  ;;  %43 = vrot.lane.b32.xlu0 %v42_v1, %s353_s8  ;;  %v302_v2 = vld.sshfl [vmem:[%s479_s0 + $0x14] sm:$0xff pattern:$0xb3a29180]   ;;  %v300_v3 = vld.sshfl [vmem:[%s479_s0 + $0x4] sm:$0xff pattern:$0xb3a29180]  }
   0x3   :  { %2 = vsyncpa [#allocation1], 0  ;;  %s354_s15 = smov 96   ;;  %s355_s16 = smov 80   ;;  %vm4_vm0 = vcmask 130048   ;;  %v3_v4 = vld [vmem:[%s479_s0] sm:$0xff]  }
   0x4   :  { %s356_s17 = smov 64   ;;  %s357_s18 = smov 48   ;;  %v297_v5 = vld [vmem:[%s479_s0 + $0x8] sm:$0xff]   ;;  %v298_v6 = vld [vmem:[%s479_s0 + $0x10] sm:$0xff]   ;;  %v299_v7 = vld [vmem:[%s479_s0 + $0x18] sm:$0xff]  }
   0x5   :  { %s358_s25 = smov 32   ;;  %5 = vst.msk [vmem:[#allocation0] ss:$16 sm:$0x3] %vm4_vm0, %v3_v4   ;;  %s359_s0 = smov 16  }
   0x6   :  { %70 = vrot.lane.b32.xlu1 %v302_v2, %s353_s8  ;;  %52 = vrot.lane.b32.xlu0 %v300_v3, %s353_s8  ;;  %6 = vst.msk [vmem:[#allocation0] ss:$16 sm:$0xc] %vm4_vm0, %v3_v4   ;;  %7 = vst.msk [vmem:[#allocation0] ss:$16 sm:$0x30] %vm4_vm0, %v3_v4  }
   0x7   :  { %8 = vst.msk [vmem:[#allocation0] ss:$16 sm:$0xc0] %vm4_vm0, %v3_v4   ;;  %13 = vst.msk [vmem:[#allocation0 + $0x8] ss:$16 sm:$0x3] %vm4_vm0, %v297_v5  }
   0x8   :  { %15 = vst.msk [vmem:[#allocation0 + $0x8] ss:$16 sm:$0xc] %vm4_vm0, %v297_v5   ;;  %17 = vst.msk [vmem:[#allocation0 + $0x8] ss:$16 sm:$0x30] %vm4_vm0, %v297_v5  }
   0x9   :  { %19 = vst.msk [vmem:[#allocation0 + $0x8] ss:$16 sm:$0xc0] %vm4_vm0, %v297_v5   ;;  %24 = vst.msk [vmem:[#allocation0 + $0x80] ss:$16 sm:$0x3] %vm4_vm0, %v298_v6  }
   0xa   :  { %87 = vrot.lane.b32.xlu1 %v300_v3, %s354_s15  ;;  %78 = vrot.lane.b32.xlu0 %v42_v1, %s354_s15  ;;  %26 = vst.msk [vmem:[#allocation0 + $0x80] ss:$16 sm:$0xc] %vm4_vm0, %v298_v6   ;;  %28 = vst.msk [vmem:[#allocation0 + $0x80] ss:$16 sm:$0x30] %vm4_vm0, %v298_v6  }
   0xb   :  { %30 = vst.msk [vmem:[#allocation0 + $0x80] ss:$16 sm:$0xc0] %vm4_vm0, %v298_v6   ;;  %35 = vst.msk [vmem:[#allocation0 + $0x88] ss:$16 sm:$0x3] %vm4_vm0, %v299_v7  }
   0xc   :  { %37 = vst.msk [vmem:[#allocation0 + $0x88] ss:$16 sm:$0xc] %vm4_vm0, %v299_v7   ;;  %39 = vst.msk [vmem:[#allocation0 + $0x88] ss:$16 sm:$0x30] %vm4_vm0, %v299_v7  }
   0xd   :  { %41 = vst.msk [vmem:[#allocation0 + $0x88] ss:$16 sm:$0xc0] %vm4_vm0, %v299_v7   ;;  %s360_s28 = smov [#allocation0]  }
   0xe   :  { %105 = vrot.lane.b32.xlu1 %v302_v2, %s354_s15  ;;  %96 = vrot.lane.b32.xlu0 %v301_v0, %s354_s15  ;;  %s291_s29 = sshll.u32 %s360_s28, 4  ;;  %s292_s29 = int_to_ptr.vmem [resolvable:$true] %s291_s29 }
   0xf   :  { %s329_s30 = scalar_lea.vmem %s292_s29, 4096  ;;  %p334_p1 = scmp.lt.s32.totalorder %s292_s29, %s292_s29 }
  0x10   :  { %p330_p0 = scmp.ne.s32.totalorder %s292_s29, %s329_s30  ;;  %p335_p2 = scmp.lt.s32.totalorder %s329_s30, %s329_s30 }
  0x12   :  { %122 = vrot.lane.b32.xlu1 %v300_v3, %s355_s16  ;;  %113 = vrot.lane.b32.xlu0 %v42_v1, %s355_s16  ;;  %p336_p3 = por %p335_p2, %p334_p1 }
  0x14   :  { %p337_p4 = pnand %p336_p3, %p330_p0 }
  0x16   :  { %140 = vrot.lane.b32.xlu1 %v302_v2, %s355_s16  ;;  %131 = vrot.lane.b32.xlu0 %v301_v0, %s355_s16 }
  0x1a   :  { %157 = vrot.lane.b32.xlu1 %v300_v3, %s356_s17  ;;  %148 = vrot.lane.b32.xlu0 %v42_v1, %s356_s17 }
  0x1e   :  { %175 = vrot.lane.b32.xlu1 %v302_v2, %s356_s17  ;;  %166 = vrot.lane.b32.xlu0 %v301_v0, %s356_s17 }
  0x22   :  { %192 = vrot.lane.b32.xlu1 %v300_v3, %s357_s18  ;;  %183 = vrot.lane.b32.xlu0 %v42_v1, %s357_s18 }
  0x26   :  { %210 = vrot.lane.b32.xlu1 %v302_v2, %s357_s18  ;;  %201 = vrot.lane.b32.xlu0 %v301_v0, %s357_s18 }
  0x2a   :  { %227 = vrot.lane.b32.xlu1 %v300_v3, %s358_s25  ;;  %218 = vrot.lane.b32.xlu0 %v42_v1, %s358_s25 }
  0x2e   :  { %245 = vrot.lane.b32.xlu1 %v302_v2, %s358_s25  ;;  %236 = vrot.lane.b32.xlu0 %v301_v0, %s358_s25 }
  0x32   :  { %262 = vrot.lane.b32.xlu1 %v300_v3, %s359_s0  ;;  %253 = vrot.lane.b32.xlu0 %v42_v1, %s359_s0 }
  0x36   :  { %280 = vrot.lane.b32.xlu1 %v302_v2, %s359_s0  ;;  %271 = vrot.lane.b32.xlu0 %v301_v0, %s359_s0 }
  0x74   :  { %v62_v8 = vpop.permute.xlu1 %61   ;;  %v44_v9 = vpop.permute.xlu0 %43  }
  0x75   :  { %65 = vst.msk [vmem:[#allocation0 + $0x81] ss:$8 sm:$0xf] %vm4_vm0, %v62_v8   ;;  %67 = vst.msk [vmem:[#allocation0 + $0x81] ss:$8 sm:$0xf0] %vm4_vm0, %v62_v8  }
  0x76   :  { %47 = vst.msk [vmem:[#allocation0 + $0x1] ss:$8 sm:$0xf] %vm4_vm0, %v44_v9   ;;  %49 = vst.msk [vmem:[#allocation0 + $0x1] ss:$8 sm:$0xf0] %vm4_vm0, %v44_v9  }
  0x78   :  { %v71_v10 = vpop.permute.xlu1 %70   ;;  %v53_v11 = vpop.permute.xlu0 %52  }
  0x79   :  { %74 = vst.msk [vmem:[#allocation0 + $0xc1] ss:$8 sm:$0xf] %vm4_vm0, %v71_v10   ;;  %76 = vst.msk [vmem:[#allocation0 + $0xc1] ss:$8 sm:$0xf0] %vm4_vm0, %v71_v10  }
  0x7a   :  { %56 = vst.msk [vmem:[#allocation0 + $0x41] ss:$8 sm:$0xf] %vm4_vm0, %v53_v11   ;;  %58 = vst.msk [vmem:[#allocation0 + $0x41] ss:$8 sm:$0xf0] %vm4_vm0, %v53_v11  }
  0x7c   :  { %v88_v12 = vpop.permute.xlu1 %87   ;;  %v79_v13 = vpop.permute.xlu0 %78  }
  0x7d   :  { %91 = vst.msk [vmem:[#allocation0 + $0x42] ss:$8 sm:$0xf] %vm4_vm0, %v88_v12   ;;  %93 = vst.msk [vmem:[#allocation0 + $0x42] ss:$8 sm:$0xf0] %vm4_vm0, %v88_v12  }
  0x7e   :  { %82 = vst.msk [vmem:[#allocation0 + $0x2] ss:$8 sm:$0xf] %vm4_vm0, %v79_v13   ;;  %84 = vst.msk [vmem:[#allocation0 + $0x2] ss:$8 sm:$0xf0] %vm4_vm0, %v79_v13  }
  0x80   :  { %v106_v14 = vpop.permute.xlu1 %105   ;;  %v97_v15 = vpop.permute.xlu0 %96  }
  0x81   :  { %109 = vst.msk [vmem:[#allocation0 + $0xc2] ss:$8 sm:$0xf] %vm4_vm0, %v106_v14   ;;  %111 = vst.msk [vmem:[#allocation0 + $0xc2] ss:$8 sm:$0xf0] %vm4_vm0, %v106_v14  }
  0x82   :  { %100 = vst.msk [vmem:[#allocation0 + $0x82] ss:$8 sm:$0xf] %vm4_vm0, %v97_v15   ;;  %102 = vst.msk [vmem:[#allocation0 + $0x82] ss:$8 sm:$0xf0] %vm4_vm0, %v97_v15  }
  0x84   :  { %v123_v16 = vpop.permute.xlu1 %122   ;;  %v114_v17 = vpop.permute.xlu0 %113  }
  0x85   :  { %126 = vst.msk [vmem:[#allocation0 + $0x43] ss:$8 sm:$0xf] %vm4_vm0, %v123_v16   ;;  %128 = vst.msk [vmem:[#allocation0 + $0x43] ss:$8 sm:$0xf0] %vm4_vm0, %v123_v16  }
  0x86   :  { %117 = vst.msk [vmem:[#allocation0 + $0x3] ss:$8 sm:$0xf] %vm4_vm0, %v114_v17   ;;  %119 = vst.msk [vmem:[#allocation0 + $0x3] ss:$8 sm:$0xf0] %vm4_vm0, %v114_v17  }
  0x88   :  { %v141_v18 = vpop.permute.xlu1 %140   ;;  %v132_v19 = vpop.permute.xlu0 %131  }
  0x89   :  { %144 = vst.msk [vmem:[#allocation0 + $0xc3] ss:$8 sm:$0xf] %vm4_vm0, %v141_v18   ;;  %146 = vst.msk [vmem:[#allocation0 + $0xc3] ss:$8 sm:$0xf0] %vm4_vm0, %v141_v18  }
  0x8a   :  { %135 = vst.msk [vmem:[#allocation0 + $0x83] ss:$8 sm:$0xf] %vm4_vm0, %v132_v19   ;;  %137 = vst.msk [vmem:[#allocation0 + $0x83] ss:$8 sm:$0xf0] %vm4_vm0, %v132_v19  }
  0x8c   :  { %v158_v20 = vpop.permute.xlu1 %157   ;;  %v149_v21 = vpop.permute.xlu0 %148  }
  0x8d   :  { %161 = vst.msk [vmem:[#allocation0 + $0x44] ss:$8 sm:$0xf] %vm4_vm0, %v158_v20   ;;  %163 = vst.msk [vmem:[#allocation0 + $0x44] ss:$8 sm:$0xf0] %vm4_vm0, %v158_v20  }
  0x8e   :  { %152 = vst.msk [vmem:[#allocation0 + $0x4] ss:$8 sm:$0xf] %vm4_vm0, %v149_v21   ;;  %154 = vst.msk [vmem:[#allocation0 + $0x4] ss:$8 sm:$0xf0] %vm4_vm0, %v149_v21  }
  0x90   :  { %v176_v22 = vpop.permute.xlu1 %175   ;;  %v167_v23 = vpop.permute.xlu0 %166  }
  0x91   :  { %179 = vst.msk [vmem:[#allocation0 + $0xc4] ss:$8 sm:$0xf] %vm4_vm0, %v176_v22   ;;  %181 = vst.msk [vmem:[#allocation0 + $0xc4] ss:$8 sm:$0xf0] %vm4_vm0, %v176_v22  }
  0x92   :  { %170 = vst.msk [vmem:[#allocation0 + $0x84] ss:$8 sm:$0xf] %vm4_vm0, %v167_v23   ;;  %172 = vst.msk [vmem:[#allocation0 + $0x84] ss:$8 sm:$0xf0] %vm4_vm0, %v167_v23  }
  0x94   :  { %v193_v24 = vpop.permute.xlu1 %192   ;;  %v184_v25 = vpop.permute.xlu0 %183  }
  0x95   :  { %196 = vst.msk [vmem:[#allocation0 + $0x45] ss:$8 sm:$0xf] %vm4_vm0, %v193_v24   ;;  %198 = vst.msk [vmem:[#allocation0 + $0x45] ss:$8 sm:$0xf0] %vm4_vm0, %v193_v24  }
  0x96   :  { %187 = vst.msk [vmem:[#allocation0 + $0x5] ss:$8 sm:$0xf] %vm4_vm0, %v184_v25   ;;  %189 = vst.msk [vmem:[#allocation0 + $0x5] ss:$8 sm:$0xf0] %vm4_vm0, %v184_v25  }
  0x98   :  { %v211_v26 = vpop.permute.xlu1 %210   ;;  %v202_v27 = vpop.permute.xlu0 %201  }
  0x99   :  { %214 = vst.msk [vmem:[#allocation0 + $0xc5] ss:$8 sm:$0xf] %vm4_vm0, %v211_v26   ;;  %216 = vst.msk [vmem:[#allocation0 + $0xc5] ss:$8 sm:$0xf0] %vm4_vm0, %v211_v26  }
  0x9a   :  { %205 = vst.msk [vmem:[#allocation0 + $0x85] ss:$8 sm:$0xf] %vm4_vm0, %v202_v27   ;;  %207 = vst.msk [vmem:[#allocation0 + $0x85] ss:$8 sm:$0xf0] %vm4_vm0, %v202_v27  }
  0x9c   :  { %v228_v28 = vpop.permute.xlu1 %227   ;;  %v219_v29 = vpop.permute.xlu0 %218  }
  0x9d   :  { %231 = vst.msk [vmem:[#allocation0 + $0x46] ss:$8 sm:$0xf] %vm4_vm0, %v228_v28   ;;  %233 = vst.msk [vmem:[#allocation0 + $0x46] ss:$8 sm:$0xf0] %vm4_vm0, %v228_v28  }
  0x9e   :  { %222 = vst.msk [vmem:[#allocation0 + $0x6] ss:$8 sm:$0xf] %vm4_vm0, %v219_v29   ;;  %224 = vst.msk [vmem:[#allocation0 + $0x6] ss:$8 sm:$0xf0] %vm4_vm0, %v219_v29  }
  0xa0   :  { %v246_v30 = vpop.permute.xlu1 %245   ;;  %v237_v31 = vpop.permute.xlu0 %236  }
  0xa1   :  { %249 = vst.msk [vmem:[#allocation0 + $0xc6] ss:$8 sm:$0xf] %vm4_vm0, %v246_v30   ;;  %251 = vst.msk [vmem:[#allocation0 + $0xc6] ss:$8 sm:$0xf0] %vm4_vm0, %v246_v30  }
  0xa2   :  { %240 = vst.msk [vmem:[#allocation0 + $0x86] ss:$8 sm:$0xf] %vm4_vm0, %v237_v31   ;;  %242 = vst.msk [vmem:[#allocation0 + $0x86] ss:$8 sm:$0xf0] %vm4_vm0, %v237_v31  }
  0xa4   :  { %v263_v32 = vpop.permute.xlu1 %262   ;;  %v254_v33 = vpop.permute.xlu0 %253  }
  0xa5   :  { %266 = vst.msk [vmem:[#allocation0 + $0x47] ss:$8 sm:$0xf] %vm4_vm0, %v263_v32   ;;  %268 = vst.msk [vmem:[#allocation0 + $0x47] ss:$8 sm:$0xf0] %vm4_vm0, %v263_v32  }
  0xa6   :  { %257 = vst.msk [vmem:[#allocation0 + $0x7] ss:$8 sm:$0xf] %vm4_vm0, %v254_v33   ;;  %259 = vst.msk [vmem:[#allocation0 + $0x7] ss:$8 sm:$0xf0] %vm4_vm0, %v254_v33  }
  0xa8   :  { %v281_v34 = vpop.permute.xlu1 %280   ;;  %v272_v35 = vpop.permute.xlu0 %271  }
  0xa9   :  { %284 = vst.msk [vmem:[#allocation0 + $0xc7] ss:$8 sm:$0xf] %vm4_vm0, %v281_v34   ;;  %286 = vst.msk [vmem:[#allocation0 + $0xc7] ss:$8 sm:$0xf0] %vm4_vm0, %v281_v34  }
  0xaa   :  { %275 = vst.msk [vmem:[#allocation0 + $0x87] ss:$8 sm:$0xf] %vm4_vm0, %v272_v35   ;;  %277 = vst.msk [vmem:[#allocation0 + $0x87] ss:$8 sm:$0xf0] %vm4_vm0, %v272_v35  }
  0xab   :  { %340 = shalt.err (!%p337_p4)
}
  0xac   :  { %s341_s4 = scalar_lea.hbm %s480_s1, 4096 }
  0xad   :  { %p342_p5 = scmp.ne.s32.totalorder %s480_s1, %s341_s4  ;;  %p345_p6 = scmp.lt.u32.totalorder %s341_s4, %s480_s1 }
  0xaf   :  { %p347_p7 = pnand %p345_p6, %p342_p5 }
  0xb1   :  { %350 = shalt.err (!%p347_p7)
}
  0xb2   :  { %294 = dma.vmem_to_hbm [thread:$0]  %s292_s29, 4096, %s480_s1, [#allocation1]  }
  0xb3   :  { %351 = dma.done.wait [#allocation1], 4096  }
  0xb4   :  { %352 = vsyncadd [#allocation1], 4294963200 }
  0xb5   :  { %296 = vsyncpa [#allocation1], 1 }

// kernel: attention_fuse_forward.7
= control target key start
LH: loop header
LB: loop body
LE: loop exit
PB: predicated region body
PF: predicated region fallthrough
CT: control target
= control target key end

     0   :  { %s785_s12 = smov 0   ;;  %s787_s13 = smov 0   ;;  %s945_s0 = inlined_call_operand.vmem [shape: f32[1,2,144,256], index: 0, kind: input, shape index: {}]   ;;  %s946_s1 = inlined_call_operand.vmem [shape: f32[1,8,144], index: 1, kind: input, shape index: {}]   ;;  %s947_s2 = inlined_call_operand.vmem [shape: f32[1,8,256], index: 2, kind: input, shape index: {}]   ;;  %s948_s3 = inlined_call_operand.vmem [shape: f32[1,2,8,256], index: 3, kind: output, shape index: {}]  }
   0x1   :  { %s789_s14 = smov 0   ;;  %s791_s15 = smov 0  }
   0x2   :  { %s793_s16 = smov 0   ;;  %s795_s17 = smov 0  }
   0x3   :  { %s797_s18 = smov 0  }
   0x4 LB: > { %s25_s19 = sadd.s32 1, %s754_s16  ;;  %s28_s20 = sadd.s32 1, %s758_s17  ;;  %s762_s18 = sphi %s797_s18, %s13_s18   ;;  %s758_s17 = sphi %s795_s17, %s954_s17   ;;  %s754_s16 = sphi %s793_s16, %s953_s16   ;;  %s750_s15 = sphi %s791_s15, %s952_s15   ;;  %s746_s14 = sphi %s789_s14, %s951_s14   ;;  %s742_s13 = sphi %s787_s13, %s950_s13   ;;  %s738_s12 = sphi %s785_s12, %s949_s12  }
   0x5   : > { %p26_p0 = scmp.ge.s32.totalorder %s25_s19, 2  ;;  %p50_p1 = scmp.ne.s32.totalorder %s742_s13, %s738_s12 }
   0x6   : > { %p51_p2 = scmp.eq.s32.totalorder %s762_s18, 0  ;;  %s43_s24 = sadd.s32 1, %s742_s13 }
   0x7   : > { %s956_s19 = smov (%p26_p0, %s25_s19), 0  ;;  %s958_s20 = smov (!%p26_p0, %s28_s20), %s758_s17 }
   0x8   : > { %p52_p3 = por %p51_p2, %p50_p1  ;;  %p30_p4 = scmp.ge.s32.totalorder %s958_s20, 2 }
   0x9   : > { %s39_s21 = ssub.s32 %s754_s16, %s956_s19  ;;  %p612_p6 = scmp.ge.s32.totalorder %s762_s18, 4 }
   0xa   : > { %s960_s20 = smov (%p30_p4, %s958_s20), 0 }
   0xb   : > { %s37_s22 = ssub.s32 %s758_s17, %s960_s20  ;;  %168 = sbr.rel (%p612_p6) target bundleno = 34 (0x22), region = 20 }
   0xc   : > { %s40_s23 = sor.u32 %s39_s21, %s37_s22 }
   0xd   : > { %p41_p5 = scmp.eq.s32.totalorder %s40_s23, 0 }
   0xf   : > { %s836_s25 = scalar_select %p41_p5, %s742_s13, %s43_s24  }
  0x12   : > { %171 = sbr.rel (!%p52_p3) target bundleno = 34 (0x22), region = 24  ;;  %s173_s26 = sand.u32 (%p52_p3), 1, %s742_s13  }
  0x13   : > { %s649_s27 = smul.u32 (%p52_p3), 36, %s758_s17 }
  0x14   : > { %s648_s28 = smul.u32 (%p52_p3), 144, %s173_s26 }
  0x15   : > { %s177_s29 = sadd.s32 (%p52_p3), %s754_s16, %s649_s27 }
  0x16   : > { %s613_s30 = sshll.u32 (%p52_p3), %s177_s29, 3  ;;  %s850_s7 = scalar_lea.vmem (%p52_p3), [#allocation2], %s648_s28 }
  0x17   : > { %s845_s6 = scalar_lea.vmem (%p52_p3), %s945_s0, %s613_s30 }
  0x18   : > { %v243_v0 = vld [vmem:[%s845_s6] sm:$0xff] (%p52_p3)  ;;  %v245_v1 = vld [vmem:[%s845_s6 + $0x10] sm:$0xff] (%p52_p3) }
  0x19   : > { %v247_v2 = vld [vmem:[%s845_s6 + $0x20] sm:$0xff]  ;;  %244 = vst [vmem:[%s850_s7] sm:$0xff] %v243_v0  ;;  %246 = vst [vmem:[%s850_s7 + $0x8] sm:$0xff] %v245_v1  ;;  %v249_v3 = vld [vmem:[%s845_s6 + $0x30] sm:$0xff] }
  0x1a   : > { %248 = vst [vmem:[%s850_s7 + $0x10] sm:$0xff] %v247_v2  ;;  %v251_v4 = vld [vmem:[%s845_s6 + $0x40] sm:$0xff]  ;;  %v253_v5 = vld [vmem:[%s845_s6 + $0x50] sm:$0xff]  ;;  %250 = vst [vmem:[%s850_s7 + $0x18] sm:$0xff] %v249_v3 }
  0x1b   : > { %252 = vst [vmem:[%s850_s7 + $0x20] sm:$0xff] %v251_v4  ;;  %254 = vst [vmem:[%s850_s7 + $0x28] sm:$0xff] %v253_v5  ;;  %v255_v6 = vld [vmem:[%s845_s6 + $0x60] sm:$0xff]  ;;  %v257_v7 = vld [vmem:[%s845_s6 + $0x70] sm:$0xff] }
  0x1c   : > { %v259_v8 = vld [vmem:[%s845_s6 + $0x80] sm:$0xff]  ;;  %256 = vst [vmem:[%s850_s7 + $0x30] sm:$0xff] %v255_v6  ;;  %258 = vst [vmem:[%s850_s7 + $0x38] sm:$0xff] %v257_v7  ;;  %v261_v9 = vld [vmem:[%s845_s6 + $0x90] sm:$0xff] }
  0x1d   : > { %260 = vst [vmem:[%s850_s7 + $0x40] sm:$0xff] %v259_v8  ;;  %v263_v10 = vld [vmem:[%s845_s6 + $0xa0] sm:$0xff]  ;;  %v265_v11 = vld [vmem:[%s845_s6 + $0xb0] sm:$0xff]  ;;  %262 = vst [vmem:[%s850_s7 + $0x48] sm:$0xff] %v261_v9 }
  0x1e   : > { %264 = vst [vmem:[%s850_s7 + $0x50] sm:$0xff] %v263_v10  ;;  %266 = vst [vmem:[%s850_s7 + $0x58] sm:$0xff] %v265_v11  ;;  %v267_v12 = vld [vmem:[%s845_s6 + $0xc0] sm:$0xff]  ;;  %v269_v13 = vld [vmem:[%s845_s6 + $0xd0] sm:$0xff] }
  0x1f   : > { %v271_v14 = vld [vmem:[%s845_s6 + $0xe0] sm:$0xff]  ;;  %268 = vst [vmem:[%s850_s7 + $0x60] sm:$0xff] %v267_v12  ;;  %270 = vst [vmem:[%s850_s7 + $0x68] sm:$0xff] %v269_v13  ;;  %v273_v15 = vld [vmem:[%s845_s6 + $0xf0] sm:$0xff] }
  0x20   : > { %272 = vst [vmem:[%s850_s7 + $0x70] sm:$0xff] %v271_v14  ;;  %v275_v16 = vld [vmem:[%s845_s6 + $0x100] sm:$0xff]  ;;  %v277_v17 = vld [vmem:[%s845_s6 + $0x110] sm:$0xff]  ;;  %274 = vst [vmem:[%s850_s7 + $0x78] sm:$0xff] %v273_v15 }
  0x21   : > { %276 = vst [vmem:[%s850_s7 + $0x80] sm:$0xff] %v275_v16  ;;  %278 = vst [vmem:[%s850_s7 + $0x88] sm:$0xff] %v277_v17 }
  0x22 PF: > { %p614_p7 = scmp.ge.s32.totalorder %s762_s18, 1  ;;  %p294_p8 = scmp.lt.s32.totalorder %s762_s18, 5 }
  0x24   : > { %p295_p9 = pnand %p614_p7, %p294_p8 }
  0x25   : > { %s301_s8 = sand.u32 (!%p295_p9), 1, %s738_s12   ;;  %v370_v18 = vld [vmem:[%s946_s1 + $0x8] sm:$0xff] (!%p295_p9)  ;;  %vm390_vm0 = vcmask (!%p295_p9), 130048   ;;  %v764_v19 = vmov (!%p295_p9), 0.0|0.0   ;;  %v369_v47 = vld [vmem:[%s946_s1] sm:$0xff] (!%p295_p9)  ;;  %p359_p10 = scmp.lt.s32.totalorder (!%p295_p9), %s750_s15, 1 }
  0x26   : > { %298 = sbr.rel (%p295_p9) target bundleno = 295 (0x127), region = 66  ;;  %621 = vmatprep.subr.bf16.mxu0 (!%p295_p9), %v764_v19  ;;  %618 = vmatprep.mubr.msk.f32.mxu0 (!%p295_p9), %vm390_vm0, %v370_v18  ;;  %p351_p11 = scmp.lt.s32.totalorder (!%p295_p9), %s746_s14, 1 }
  0x27   : > { %s650_s11 = smul.u32 (!%p295_p9), 144, %s301_s8 }
  0x29   : > { %s891_s21 = scalar_lea.vmem (!%p295_p9), [#allocation2], %s650_s11 }
  0x2a   : > { %v371_v20 = vld [vmem:[%s891_s21] sm:$0xff] (!%p295_p9)  ;;  %v372_v21 = vld [vmem:[%s891_s21 + $0x8] sm:$0xff] (!%p295_p9)  ;;  %v373_v22 = vld [vmem:[%s891_s21 + $0x10] sm:$0xff] (!%p295_p9) }
  0x2b   : > { %v622_v23 = vpack.c.bf16 (!%p295_p9), %v372_v21, %v371_v20  ;;  %v374_v24 = vld [vmem:[%s891_s21 + $0x18] sm:$0xff] (!%p295_p9)  ;;  %v375_v26 = vld [vmem:[%s891_s21 + $0x20] sm:$0xff] (!%p295_p9)  ;;  %v376_v27 = vld [vmem:[%s891_s21 + $0x28] sm:$0xff] (!%p295_p9) }
  0x2c   : > { %v625_v25 = vpack.c.bf16 (!%p295_p9), %v374_v24, %v373_v22  ;;  %v628_v28 = vpack.c.bf16 (!%p295_p9), %v376_v27, %v375_v26  ;;  %v377_v29 = vld [vmem:[%s891_s21 + $0x30] sm:$0xff] (!%p295_p9)  ;;  %v378_v30 = vld [vmem:[%s891_s21 + $0x38] sm:$0xff] (!%p295_p9)  ;;  %v379_v32 = vld [vmem:[%s891_s21 + $0x40] sm:$0xff] (!%p295_p9) }
  0x2d   : > { %623 = vmatpush1.bf16.msra.mxu0 %v622_v23  ;;  %v631_v31 = vpack.c.bf16 %v378_v30, %v377_v29  ;;  %v380_v33 = vld [vmem:[%s891_s21 + $0x48] sm:$0xff]  ;;  %v381_v35 = vld [vmem:[%s891_s21 + $0x50] sm:$0xff]  ;;  %v382_v36 = vld [vmem:[%s891_s21 + $0x58] sm:$0xff]  ;;  %s962_s15 = smov (!%p359_p10, %s750_s15), 1  ;;  %s964_s14 = smov (!%p351_p11, %s746_s14), 1 }
  0x2e   : > { %624 = vmatprep.subr.bf16.mxu0 %v764_v19  ;;  %v634_v34 = vpack.c.bf16 %v380_v33, %v379_v32  ;;  %v637_v37 = vpack.c.bf16 %v382_v36, %v381_v35  ;;  %v383_v38 = vld [vmem:[%s891_s21 + $0x60] sm:$0xff]  ;;  %v384_v39 = vld [vmem:[%s891_s21 + $0x68] sm:$0xff]  ;;  %v385_v41 = vld [vmem:[%s891_s21 + $0x70] sm:$0xff]  ;;  %s616_s23 = sshll.u32 %s962_s15, 1  ;;  %s615_s24 = sshll.u32 %s964_s14, 3 }
  0x2f   : > { %v640_v40 = vpack.c.bf16 %v384_v39, %v383_v38  ;;  %v386_v42 = vld [vmem:[%s891_s21 + $0x78] sm:$0xff]  ;;  %v387_v44 = vld [vmem:[%s891_s21 + $0x80] sm:$0xff]  ;;  %v388_v45 = vld [vmem:[%s891_s21 + $0x88] sm:$0xff]  ;;  %s364_s26 = sadd.s32 %s616_s23, %s964_s14  ;;  %s356_s29 = scalar_lea.vmem %s947_s2, %s615_s24 }
  0x30   : > { %v643_v43 = vpack.c.bf16 %v386_v42, %v385_v41  ;;  %v646_v46 = vpack.c.bf16 %v388_v45, %v387_v44  ;;  %s617_s30 = sshll.u32 %s364_s26, 3  ;;  %v389_v48 = vld [vmem:[%s356_s29] sm:$0xff] }
  0x31   : > { %626 = vmatpush1.bf16.msra.mxu0 %v625_v25  ;;  %s368_s6 = scalar_lea.vmem %s948_s3, %s617_s30 }
  0x32   : > { %627 = vmatprep.subr.bf16.mxu0 %v764_v19 }
  0x35   : > { %629 = vmatpush1.bf16.msra.mxu0 %v628_v28 }
  0x36   : > { %630 = vmatprep.subr.bf16.mxu0 %v764_v19 }
  0x39   : > { %632 = vmatpush1.bf16.msra.mxu0 %v631_v31 }
  0x3a   : > { %633 = vmatprep.subr.bf16.mxu0 %v764_v19 }
  0x3d   : > { %635 = vmatpush1.bf16.msra.mxu0 %v634_v34 }
  0x3e   : > { %636 = vmatprep.subr.bf16.mxu0 %v764_v19 }
  0x41   : > { %638 = vmatpush1.bf16.msra.mxu0 %v637_v37 }
  0x42   : > { %639 = vmatprep.subr.bf16.mxu0 %v764_v19 }
  0x45   : > { %641 = vmatpush1.bf16.msra.mxu0 %v640_v40 }
  0x46   : > { %642 = vmatprep.subr.bf16.mxu0 %v764_v19 }
  0x49   : > { %644 = vmatpush1.bf16.msra.mxu0 %v643_v43 }
  0x4a   : > { %645 = vmatprep.subr.bf16.mxu0 %v764_v19 }
  0x4d   : > { %647 = vmatpush1.bf16.msra.mxu0 %v646_v46 }
  0x50   : > { %459 = vmatmul.mubr.f32.vlgmr.msra.gmra.mrb[0].mxu0 %v369_v47 }
 0x123   : > { %v460_v49 = vpop.f32.mrb[0].mxu0 }
 0x124   : > { %v461_v50 = vadd.f32 %v460_v49, %v389_v48  ;;  %v462_v51 = vpop.f32.mrb[1].mxu0 }
 0x126   : > { %464 = vst [vmem:[%s368_s6] sm:$0xff] %v461_v50 }
 0x127 PF: > { %s13_s18 = sadd.s32 1, %s762_s18   ;;  %s949_s12 = smov %s742_s13 }
 0x128   : > { %p10_p12 = scmp.ge.s32.totalorder %s13_s18, 6   ;;  %s950_s13 = smov %s836_s25 }
 0x129   : > { %s951_s14 = smov %s754_s16  ;;  %s952_s15 = smov %s758_s17 }
 0x12a   : > { %s953_s16 = smov %s956_s19  ;;  %s954_s17 = smov %s960_s20 }
 0x12b   :  { %12 = sbr.rel (!%p10_p12) target bundleno = 4 (0x4), region = 111 }

</bundles_post_ra>
